<compile_context>
chip_gen: v7x
topology: tpu7x:2x2x1
jax: 0.10.0
libtpu: 0.0.40
codegen_flags: <defaults>
</compile_context>

<pallas_src>
import functools

import jax
import jax.numpy as jnp
from jax.experimental import pallas as pl
from jax.experimental.pallas import tpu as pltpu


def _loss_partials_kernel(pred_ref, true_ref, widx_ref, out_ref, *,
                          num_iter, H, W, HW, TB, comp_dtype):
    b = pl.program_id(0)

    @pl.when(b == 0)
    def _():
        for i in range(8):
            out_ref[i] = jnp.float32(0.0)

    C = pred_ref.shape[1]
    HWp = pred_ref.shape[2]
    Cf = C - 1

    # ---- grid-invariant index vectors / masks (all (1, HWp), broadcast later) ----
    pos = jax.lax.broadcasted_iota(jnp.int32, (1, HWp), 1)   # flattened h*W + w
    w_idx = widx_ref[...]                                    # (1, HWp) w coordinate
    m_up = pos < W                                           # h == 0
    m_down = pos >= (H - 1) * W                              # h == H-1 (and padding)
    m_left = w_idx == 0                                      # w == 0
    m_right = w_idx == (W - 1)                               # w == W-1
    ch = jax.lax.broadcasted_iota(jnp.int32, (Cf, HWp), 0) + 1

    # ---- per-sample softmax (fg slice) + fg one-hot, stacked on sublanes --------
    yp_list, yt_list = [], []
    for t in range(TB):
        logits = pred_ref[t].astype(jnp.float32)             # (C, HWp)
        labels = true_ref[t]                                 # (1, HWp) int32
        m = jnp.max(logits, axis=0, keepdims=True)
        e = jnp.exp(logits - m)
        inv_den = pl.reciprocal(jnp.sum(e, axis=0, keepdims=True))   # exact
        yp_t = e[1:] * inv_den                               # (Cf, HWp) fg probs
        if HWp != HW:                                        # zero padded columns
            yp_t = jnp.where(pos < HW, yp_t, 0.0)
        yt_t = (ch == labels).astype(jnp.float32)            # padded labels are 0
        yp_list.append(yp_t)
        yt_list.append(yt_t)
    yp = yp_list[0] if TB == 1 else jnp.concatenate(yp_list, axis=0)  # (TB*Cf, HWp)
    yt = yt_list[0] if TB == 1 else jnp.concatenate(yt_list, axis=0)

    # ---- dice partial sums (f32, global over batch + fg channels) ---------------
    out_ref[0] = out_ref[0] + jnp.sum(yt * yp)      # dice intersection
    out_ref[1] = out_ref[1] + jnp.sum(yt)           # dice |true|
    out_ref[2] = out_ref[2] + jnp.sum(yp)           # dice |pred|

    # ---- soft skeleton of [yp ; yt] in a single pass ----------------------------
    def shifted(x, k, invalid):
        # result[:, p] = x[:, p - k]; `invalid` border positions fall back to the
        # center value, which is neutral because every pool includes the center
        # (matches max_pool2d's implicit -inf padding).  Single XLU lane rotation.
        k = k % HWp
        if k == 0:
            return x
        r = pltpu.roll(x, k, axis=1)
        return jnp.where(invalid, x, r)

    def erode(x):      # min over the 5-point cross
        mh = jnp.minimum(shifted(x, W, m_up), shifted(x, -W, m_down))
        mw = jnp.minimum(shifted(x, 1, m_left), shifted(x, -1, m_right))
        return jnp.minimum(x, jnp.minimum(mh, mw))

    def dilate(x):     # separable 3x3 max pool
        mw = jnp.maximum(x, jnp.maximum(shifted(x, 1, m_left),
                                        shifted(x, -1, m_right)))
        return jnp.maximum(mw, jnp.maximum(shifted(mw, W, m_up),
                                           shifted(mw, -W, m_down)))

    def open_delta(img, er):    # relu(img - dilate(erode(img))), accumulated in f32
        dil = dilate(er)
        return jnp.maximum(img.astype(jnp.float32) - dil.astype(jnp.float32), 0.0)

    stk = jnp.concatenate([yp, yt], axis=0).astype(comp_dtype)   # (2*TB*Cf, HWp)

    # erode CSE: erode(img_j) inside soft_open(img_j) is exactly the erode that
    # starts iteration j+1 of the reference loop, so compute it once per state.
    img = stk
    er = erode(img)
    skel = open_delta(img, er)                      # f32 recurrence
    for _ in range(num_iter):
        img = er
        er = erode(img)
        delta = open_delta(img, er)
        skel = skel + jnp.maximum(delta - skel * delta, 0.0)

    R = TB * Cf
    skel_p = skel[:R]                               # skeleton of yp
    skel_t = skel[R:]                               # skeleton of yt
    out_ref[3] = out_ref[3] + jnp.sum(skel_p * yt)
    out_ref[4] = out_ref[4] + jnp.sum(skel_p)
    out_ref[5] = out_ref[5] + jnp.sum(skel_t * yp)
    out_ref[6] = out_ref[6] + jnp.sum(skel_t)
    # slot 7 is padding


def _skeleton_compute_dtype():
    """bf16 skeleton math on chips with a bf16 VPU (v6e / v7x); f32 otherwise."""
    try:
        kind = jax.devices()[0].device_kind.lower()
    except Exception:
        return jnp.float32
    if any(t in kind for t in ("v6", "v7", "tpu7", "trillium", "ironwood")):
        return jnp.bfloat16
    return jnp.float32


def _vmem_capacity_bytes():
    try:
        cap = int(pltpu.get_tpu_info().vmem_capacity_bytes)
        if cap > 0:
            return cap
    except Exception:
        pass
    return 64 * 1024 * 1024      # conservative fallback (safe on every generation)


def dice_cldice_loss(y_pred_logits, y_true, *, iter_=3, smooth=1.0,
                     weight_dice=1.0, weight_cldice=1.0):
    """y_pred_logits: (B, C, H, W) logits; y_true: (B, 1, H, W) integer class ids."""
    B, C, H, W = y_pred_logits.shape
    assert y_true.shape == (B, 1, H, W)
    assert C >= 2, "need at least one foreground channel"
    Cf = C - 1
    HW = H * W
    HWp = ((HW + 127) // 128) * 128        # lane-align so pltpu.roll is always used

    in_esize = jnp.dtype(y_pred_logits.dtype).itemsize
    comp_dtype = _skeleton_compute_dtype()
    comp_esize = jnp.dtype(comp_dtype).itemsize
    vmem_cap = _vmem_capacity_bytes()

    # Approximate VMEM one in-flight sample costs (pipelined inputs + live temps).
    per_sample = HWp * (2 * C * in_esize + 2 * 4          # double-buffered pred+labels
                        + Cf * 2 * 4                      # yp, yt (f32)
                        + 2 * Cf * (6 * comp_esize + 2 * 4))  # skeleton temps + skel
    # Samples per grid step: divisor of B, bounded by a VMEM budget and a sane
    # sublane-row count for the stacked skeleton array.
    budget = int(0.35 * vmem_cap)
    TB = 1
    for tb in range(1, B + 1):
        if B % tb == 0 and tb * per_sample <= budget and 2 * tb * Cf <= 64:
            TB = tb

    # Free contiguous reshape (spatial plane -> lane axis) + lane padding.
    pred = y_pred_logits.reshape(B, C, HW)
    labels = y_true.reshape(B, 1, HW)
    if labels.dtype != jnp.int32:
        labels = labels.astype(jnp.int32)
    if HWp != HW:
        pred = jnp.pad(pred, ((0, 0), (0, 0), (0, HWp - HW)))
        labels = jnp.pad(labels, ((0, 0), (0, 0), (0, HWp - HW)))  # pad = background
    w_coord = (jnp.arange(HWp, dtype=jnp.int32) % W).reshape(1, HWp)

    vmem_limit = int(min(max(TB * per_sample + (8 << 20), 32 << 20),
                         int(0.8 * vmem_cap)))
    # TODO(synk): for very large H*W, tile H into row blocks with a (2 + 2*iter_)
    # row halo and emit per-block partials with a "parallel" batch axis so v7x's
    # two TensorCores can split the work; the whole-plane path below is single-core.

    kernel = functools.partial(_loss_partials_kernel, num_iter=iter_, H=H, W=W,
                               HW=HW, TB=TB, comp_dtype=comp_dtype)
    partials = pl.pallas_call(
        kernel,
        out_shape=jax.ShapeDtypeStruct((8,), jnp.float32),
        grid_spec=pltpu.PrefetchScalarGridSpec(
            num_scalar_prefetch=0,
            grid=(B // TB,),
            in_specs=[
                pl.BlockSpec((TB, C, HWp), lambda b: (b, 0, 0)),
                pl.BlockSpec((TB, 1, HWp), lambda b: (b, 0, 0)),
                pl.BlockSpec((1, HWp), lambda b: (0, 0)),
            ],
            out_specs=pl.BlockSpec(memory_space=pltpu.MemorySpace.SMEM),
        ),
        compiler_params=pltpu.CompilerParams(
            dimension_semantics=("arbitrary",),     # resident SMEM accumulator
            vmem_limit_bytes=vmem_limit,
        ),
    )(pred, labels, w_coord)

    inter, s_true, s_pred = partials[0], partials[1], partials[2]
    sp_yt, sp_s, st_yp, st_s = partials[3], partials[4], partials[5], partials[6]

    dice = 1.0 - (2.0 * inter + smooth) / (s_true + s_pred + smooth)
    tprec = (sp_yt + smooth) / (sp_s + smooth)
    tsens = (st_yp + smooth) / (st_s + smooth)
    cl_dice = 1.0 - 2.0 * (tprec * tsens) / (tprec + tsens)
    return weight_dice * dice + weight_cldice * cl_dice


if __name__ == "__main__":
    key = jax.random.PRNGKey(0)
    B, C, H, W = 2, 4, 16, 16
    k1, k2 = jax.random.split(key)
    y_pred = jax.random.normal(k1, (B, C, H, W), dtype=jnp.float32)
    y_true = jax.random.randint(k2, (B, 1, H, W), 0, C, dtype=jnp.int32)

    loss = dice_cldice_loss(y_pred, y_true, iter_=3, smooth=1.0,
                            weight_dice=1.0, weight_cldice=1.0)
    jax.block_until_ready(loss)
    print("KERNEL_OK")
</pallas_src>

<mosaic_0001>
module attributes {stable_mosaic.version = 11 : i64} {
  func.func @_loss_partials_kernel(%arg0: i32, %arg1: memref<2x4x256xf32, #tpu.memory_space<vmem>>, %arg2: memref<2x1x256xi32, #tpu.memory_space<vmem>>, %arg3: memref<1x256xi32, #tpu.memory_space<vmem>>, %arg4: memref<8xf32, #tpu.memory_space<smem>>) attributes {dimension_semantics = [#tpu.dimension_semantics<arbitrary>], iteration_bounds = array<i64: 1>, scalar_prefetch = 0 : i64, scratch_operands = 0 : i64, tpu.core_type = #tpu.core_type<tc>, window_params = [{transform_indices = @transform_0, window_bounds = array<i64: 2, 4, 256>}, {transform_indices = @transform_1, window_bounds = array<i64: 2, 1, 256>}, {pipeline_mode = #tpu.pipeline_mode<synchronous>, transform_indices = @transform_2, window_bounds = array<i64: 1, 256>}, {transform_indices = @transform_3, window_bounds = array<i64: 8>}]} {
    %c0_i32 = arith.constant 0 : i32
    %0 = arith.cmpi eq, %arg0, %c0_i32 : i32
    %1 = arith.extui %0 : i1 to i32
    %c0_i32_0 = arith.constant 0 : i32
    %2 = arith.cmpi ne, %1, %c0_i32_0 : i32
    scf.if %2 {
      %cst_71 = arith.constant 0.000000e+00 : f32
      %c0_72 = arith.constant 0 : index
      %298 = memref.load %arg4[%c0_72] : memref<8xf32, #tpu.memory_space<smem>>
      memref.store %cst_71, %arg4[%c0_72] : memref<8xf32, #tpu.memory_space<smem>>
      %cst_73 = arith.constant 0.000000e+00 : f32
      %c1_74 = arith.constant 1 : index
      %299 = memref.load %arg4[%c1_74] : memref<8xf32, #tpu.memory_space<smem>>
      memref.store %cst_73, %arg4[%c1_74] : memref<8xf32, #tpu.memory_space<smem>>
      %cst_75 = arith.constant 0.000000e+00 : f32
      %c2_76 = arith.constant 2 : index
      %300 = memref.load %arg4[%c2_76] : memref<8xf32, #tpu.memory_space<smem>>
      memref.store %cst_75, %arg4[%c2_76] : memref<8xf32, #tpu.memory_space<smem>>
      %cst_77 = arith.constant 0.000000e+00 : f32
      %c3_78 = arith.constant 3 : index
      %301 = memref.load %arg4[%c3_78] : memref<8xf32, #tpu.memory_space<smem>>
      memref.store %cst_77, %arg4[%c3_78] : memref<8xf32, #tpu.memory_space<smem>>
      %cst_79 = arith.constant 0.000000e+00 : f32
      %c4_80 = arith.constant 4 : index
      %302 = memref.load %arg4[%c4_80] : memref<8xf32, #tpu.memory_space<smem>>
      memref.store %cst_79, %arg4[%c4_80] : memref<8xf32, #tpu.memory_space<smem>>
      %cst_81 = arith.constant 0.000000e+00 : f32
      %c5_82 = arith.constant 5 : index
      %303 = memref.load %arg4[%c5_82] : memref<8xf32, #tpu.memory_space<smem>>
      memref.store %cst_81, %arg4[%c5_82] : memref<8xf32, #tpu.memory_space<smem>>
      %cst_83 = arith.constant 0.000000e+00 : f32
      %c6_84 = arith.constant 6 : index
      %304 = memref.load %arg4[%c6_84] : memref<8xf32, #tpu.memory_space<smem>>
      memref.store %cst_83, %arg4[%c6_84] : memref<8xf32, #tpu.memory_space<smem>>
      %cst_85 = arith.constant 0.000000e+00 : f32
      %c7 = arith.constant 7 : index
      %305 = memref.load %arg4[%c7] : memref<8xf32, #tpu.memory_space<smem>>
      memref.store %cst_85, %arg4[%c7] : memref<8xf32, #tpu.memory_space<smem>>
    } else {
    }
    %3 = tpu.iota {dimensions = array<i32: 1>} : vector<1x256xi32>
    %c0 = arith.constant 0 : index
    %c0_1 = arith.constant 0 : index
    %4 = vector.load %arg3[%c0, %c0_1] : memref<1x256xi32, #tpu.memory_space<vmem>>, vector<1x256xi32>
    %c16_i32 = arith.constant 16 : i32
    %5 = vector.broadcast %c16_i32 : i32 to vector<1x256xi32>
    %6 = arith.cmpi slt, %3, %5 : vector<1x256xi32>
    %c240_i32 = arith.constant 240 : i32
    %7 = vector.broadcast %c240_i32 : i32 to vector<1x256xi32>
    %8 = arith.cmpi sge, %3, %7 : vector<1x256xi32>
    %c0_i32_2 = arith.constant 0 : i32
    %9 = vector.broadcast %c0_i32_2 : i32 to vector<1x256xi32>
    %10 = arith.cmpi eq, %4, %9 : vector<1x256xi32>
    %c15_i32 = arith.constant 15 : i32
    %11 = vector.broadcast %c15_i32 : i32 to vector<1x256xi32>
    %12 = arith.cmpi eq, %4, %11 : vector<1x256xi32>
    %13 = tpu.iota {dimensions = array<i32: 0>} : vector<3x256xi32>
    %c1_i32 = arith.constant 1 : i32
    %14 = vector.broadcast %c1_i32 : i32 to vector<3x256xi32>
    %15 = arith.addi %13, %14 : vector<3x256xi32>
    %c0_3 = arith.constant 0 : index
    %c0_4 = arith.constant 0 : index
    %c0_5 = arith.constant 0 : index
    %16 = vector.load %arg1[%c0_3, %c0_4, %c0_5] : memref<2x4x256xf32, #tpu.memory_space<vmem>>, vector<1x4x256xf32>
    %17 = vector.shape_cast %16 : vector<1x4x256xf32> to vector<4x256xf32>
    %c0_6 = arith.constant 0 : index
    %c0_7 = arith.constant 0 : index
    %c0_8 = arith.constant 0 : index
    %18 = vector.load %arg2[%c0_6, %c0_7, %c0_8] : memref<2x1x256xi32, #tpu.memory_space<vmem>>, vector<1x1x256xi32>
    %19 = vector.shape_cast %18 : vector<1x1x256xi32> to vector<1x256xi32>
    %cst = arith.constant dense<0xFF800000> : vector<256xf32>
    %20 = vector.multi_reduction <maximumf>, %17, %cst [0] : vector<4x256xf32> to vector<256xf32>
    %21 = vector.shape_cast %20 : vector<256xf32> to vector<1x256xf32>
    %22 = vector.broadcast %21 : vector<1x256xf32> to vector<4x256xf32>
    %23 = arith.subf %17, %22 : vector<4x256xf32>
    %24 = math.exp %23 : vector<4x256xf32>
    %cst_9 = arith.constant dense<0.000000e+00> : vector<256xf32>
    %25 = vector.multi_reduction <add>, %24, %cst_9 [0] : vector<4x256xf32> to vector<256xf32>
    %26 = vector.shape_cast %25 : vector<256xf32> to vector<1x256xf32>
    %27 = tpu.reciprocal %26 : vector<1x256xf32> -> vector<1x256xf32>
    %28 = vector.extract_strided_slice %24 {offsets = [1, 0], sizes = [3, 256], strides = [1, 1]} : vector<4x256xf32> to vector<3x256xf32>
    %29 = vector.broadcast %27 : vector<1x256xf32> to vector<3x256xf32>
    %30 = arith.mulf %28, %29 : vector<3x256xf32>
    %31 = vector.broadcast %19 : vector<1x256xi32> to vector<3x256xi32>
    %32 = arith.cmpi eq, %15, %31 : vector<3x256xi32>
    %33 = arith.extui %32 : vector<3x256xi1> to vector<3x256xi32>
    %34 = arith.sitofp %33 : vector<3x256xi32> to vector<3x256xf32>
    %c1 = arith.constant 1 : index
    %c0_10 = arith.constant 0 : index
    %c0_11 = arith.constant 0 : index
    %35 = vector.load %arg1[%c1, %c0_10, %c0_11] : memref<2x4x256xf32, #tpu.memory_space<vmem>>, vector<1x4x256xf32>
    %36 = vector.shape_cast %35 : vector<1x4x256xf32> to vector<4x256xf32>
    %c1_12 = arith.constant 1 : index
    %c0_13 = arith.constant 0 : index
    %c0_14 = arith.constant 0 : index
    %37 = vector.load %arg2[%c1_12, %c0_13, %c0_14] : memref<2x1x256xi32, #tpu.memory_space<vmem>>, vector<1x1x256xi32>
    %38 = vector.shape_cast %37 : vector<1x1x256xi32> to vector<1x256xi32>
    %cst_15 = arith.constant dense<0xFF800000> : vector<256xf32>
    %39 = vector.multi_reduction <maximumf>, %36, %cst_15 [0] : vector<4x256xf32> to vector<256xf32>
    %40 = vector.shape_cast %39 : vector<256xf32> to vector<1x256xf32>
    %41 = vector.broadcast %40 : vector<1x256xf32> to vector<4x256xf32>
    %42 = arith.subf %36, %41 : vector<4x256xf32>
    %43 = math.exp %42 : vector<4x256xf32>
    %cst_16 = arith.constant dense<0.000000e+00> : vector<256xf32>
    %44 = vector.multi_reduction <add>, %43, %cst_16 [0] : vector<4x256xf32> to vector<256xf32>
    %45 = vector.shape_cast %44 : vector<256xf32> to vector<1x256xf32>
    %46 = tpu.reciprocal %45 : vector<1x256xf32> -> vector<1x256xf32>
    %47 = vector.extract_strided_slice %43 {offsets = [1, 0], sizes = [3, 256], strides = [1, 1]} : vector<4x256xf32> to vector<3x256xf32>
    %48 = vector.broadcast %46 : vector<1x256xf32> to vector<3x256xf32>
    %49 = arith.mulf %47, %48 : vector<3x256xf32>
    %50 = vector.broadcast %38 : vector<1x256xi32> to vector<3x256xi32>
    %51 = arith.cmpi eq, %15, %50 : vector<3x256xi32>
    %52 = arith.extui %51 : vector<3x256xi1> to vector<3x256xi32>
    %53 = arith.sitofp %52 : vector<3x256xi32> to vector<3x256xf32>
    %54 = tpu.concatenate %30, %49 in 0 : vector<3x256xf32>, vector<3x256xf32> -> vector<6x256xf32>
    %55 = tpu.concatenate %34, %53 in 0 : vector<3x256xf32>, vector<3x256xf32> -> vector<6x256xf32>
    %c0_17 = arith.constant 0 : index
    %56 = memref.load %arg4[%c0_17] : memref<8xf32, #tpu.memory_space<smem>>
    %57 = arith.mulf %55, %54 : vector<6x256xf32>
    %58 = vector.shape_cast %57 : vector<6x256xf32> to vector<1x6x256xf32>
    %cst_18 = arith.constant dense<0.000000e+00> : vector<1xf32>
    %59 = vector.multi_reduction <add>, %58, %cst_18 [1, 2] : vector<1x6x256xf32> to vector<1xf32>
    %60 = vector.shape_cast %59 : vector<1xf32> to vector<1x1x1xf32>
    %61 = vector.extract %60[0, 0, 0] : f32 from vector<1x1x1xf32>
    %62 = arith.addf %56, %61 : f32
    %c0_19 = arith.constant 0 : index
    %63 = memref.load %arg4[%c0_19] : memref<8xf32, #tpu.memory_space<smem>>
    memref.store %62, %arg4[%c0_19] : memref<8xf32, #tpu.memory_space<smem>>
    %c1_20 = arith.constant 1 : index
    %64 = memref.load %arg4[%c1_20] : memref<8xf32, #tpu.memory_space<smem>>
    %65 = vector.shape_cast %55 : vector<6x256xf32> to vector<1x6x256xf32>
    %cst_21 = arith.constant dense<0.000000e+00> : vector<1xf32>
    %66 = vector.multi_reduction <add>, %65, %cst_21 [1, 2] : vector<1x6x256xf32> to vector<1xf32>
    %67 = vector.shape_cast %66 : vector<1xf32> to vector<1x1x1xf32>
    %68 = vector.extract %67[0, 0, 0] : f32 from vector<1x1x1xf32>
    %69 = arith.addf %64, %68 : f32
    %c1_22 = arith.constant 1 : index
    %70 = memref.load %arg4[%c1_22] : memref<8xf32, #tpu.memory_space<smem>>
    memref.store %69, %arg4[%c1_22] : memref<8xf32, #tpu.memory_space<smem>>
    %c2 = arith.constant 2 : index
    %71 = memref.load %arg4[%c2] : memref<8xf32, #tpu.memory_space<smem>>
    %72 = vector.shape_cast %54 : vector<6x256xf32> to vector<1x6x256xf32>
    %cst_23 = arith.constant dense<0.000000e+00> : vector<1xf32>
    %73 = vector.multi_reduction <add>, %72, %cst_23 [1, 2] : vector<1x6x256xf32> to vector<1xf32>
    %74 = vector.shape_cast %73 : vector<1xf32> to vector<1x1x1xf32>
    %75 = vector.extract %74[0, 0, 0] : f32 from vector<1x1x1xf32>
    %76 = arith.addf %71, %75 : f32
    %c2_24 = arith.constant 2 : index
    %77 = memref.load %arg4[%c2_24] : memref<8xf32, #tpu.memory_space<smem>>
    memref.store %76, %arg4[%c2_24] : memref<8xf32, #tpu.memory_space<smem>>
    %78 = tpu.concatenate %54, %55 in 0 : vector<6x256xf32>, vector<6x256xf32> -> vector<12x256xf32>
    %c16_i32_25 = arith.constant 16 : i32
    %79 = tpu.dynamic_rotate %78 by %c16_i32_25 dim 1 : vector<12x256xf32>, i32 -> vector<12x256xf32>
    %80 = vector.shape_cast %6 : vector<1x256xi1> to vector<1x256xi1>
    %81 = vector.broadcast %80 : vector<1x256xi1> to vector<12x256xi1>
    %82 = arith.select %81, %78, %79 : vector<12x256xi1>, vector<12x256xf32>
    %c240_i32_26 = arith.constant 240 : i32
    %83 = tpu.dynamic_rotate %78 by %c240_i32_26 dim 1 : vector<12x256xf32>, i32 -> vector<12x256xf32>
    %84 = vector.shape_cast %8 : vector<1x256xi1> to vector<1x256xi1>
    %85 = vector.broadcast %84 : vector<1x256xi1> to vector<12x256xi1>
    %86 = arith.select %85, %78, %83 : vector<12x256xi1>, vector<12x256xf32>
    %87 = arith.minimumf %82, %86 : vector<12x256xf32>
    %c1_i32_27 = arith.constant 1 : i32
    %88 = tpu.dynamic_rotate %78 by %c1_i32_27 dim 1 : vector<12x256xf32>, i32 -> vector<12x256xf32>
    %89 = vector.shape_cast %10 : vector<1x256xi1> to vector<1x256xi1>
    %90 = vector.broadcast %89 : vector<1x256xi1> to vector<12x256xi1>
    %91 = arith.select %90, %78, %88 : vector<12x256xi1>, vector<12x256xf32>
    %c255_i32 = arith.constant 255 : i32
    %92 = tpu.dynamic_rotate %78 by %c255_i32 dim 1 : vector<12x256xf32>, i32 -> vector<12x256xf32>
    %93 = vector.shape_cast %12 : vector<1x256xi1> to vector<1x256xi1>
    %94 = vector.broadcast %93 : vector<1x256xi1> to vector<12x256xi1>
    %95 = arith.select %94, %78, %92 : vector<12x256xi1>, vector<12x256xf32>
    %96 = arith.minimumf %91, %95 : vector<12x256xf32>
    %97 = arith.minimumf %87, %96 : vector<12x256xf32>
    %98 = arith.minimumf %78, %97 : vector<12x256xf32>
    %c1_i32_28 = arith.constant 1 : i32
    %99 = tpu.dynamic_rotate %98 by %c1_i32_28 dim 1 : vector<12x256xf32>, i32 -> vector<12x256xf32>
    %100 = vector.shape_cast %10 : vector<1x256xi1> to vector<1x256xi1>
    %101 = vector.broadcast %100 : vector<1x256xi1> to vector<12x256xi1>
    %102 = arith.select %101, %98, %99 : vector<12x256xi1>, vector<12x256xf32>
    %c255_i32_29 = arith.constant 255 : i32
    %103 = tpu.dynamic_rotate %98 by %c255_i32_29 dim 1 : vector<12x256xf32>, i32 -> vector<12x256xf32>
    %104 = vector.shape_cast %12 : vector<1x256xi1> to vector<1x256xi1>
    %105 = vector.broadcast %104 : vector<1x256xi1> to vector<12x256xi1>
    %106 = arith.select %105, %98, %103 : vector<12x256xi1>, vector<12x256xf32>
    %107 = arith.maximumf %102, %106 : vector<12x256xf32>
    %108 = arith.maximumf %98, %107 : vector<12x256xf32>
    %c16_i32_30 = arith.constant 16 : i32
    %109 = tpu.dynamic_rotate %108 by %c16_i32_30 dim 1 : vector<12x256xf32>, i32 -> vector<12x256xf32>
    %110 = vector.shape_cast %6 : vector<1x256xi1> to vector<1x256xi1>
    %111 = vector.broadcast %110 : vector<1x256xi1> to vector<12x256xi1>
    %112 = arith.select %111, %108, %109 : vector<12x256xi1>, vector<12x256xf32>
    %c240_i32_31 = arith.constant 240 : i32
    %113 = tpu.dynamic_rotate %108 by %c240_i32_31 dim 1 : vector<12x256xf32>, i32 -> vector<12x256xf32>
    %114 = vector.shape_cast %8 : vector<1x256xi1> to vector<1x256xi1>
    %115 = vector.broadcast %114 : vector<1x256xi1> to vector<12x256xi1>
    %116 = arith.select %115, %108, %113 : vector<12x256xi1>, vector<12x256xf32>
    %117 = arith.maximumf %112, %116 : vector<12x256xf32>
    %118 = arith.maximumf %108, %117 : vector<12x256xf32>
    %119 = arith.subf %78, %118 : vector<12x256xf32>
    %cst_32 = arith.constant 0.000000e+00 : f32
    %120 = vector.broadcast %cst_32 : f32 to vector<12x256xf32>
    %121 = arith.maximumf %119, %120 : vector<12x256xf32>
    %c16_i32_33 = arith.constant 16 : i32
    %122 = tpu.dynamic_rotate %98 by %c16_i32_33 dim 1 : vector<12x256xf32>, i32 -> vector<12x256xf32>
    %123 = vector.shape_cast %6 : vector<1x256xi1> to vector<1x256xi1>
    %124 = vector.broadcast %123 : vector<1x256xi1> to vector<12x256xi1>
    %125 = arith.select %124, %98, %122 : vector<12x256xi1>, vector<12x256xf32>
    %c240_i32_34 = arith.constant 240 : i32
    %126 = tpu.dynamic_rotate %98 by %c240_i32_34 dim 1 : vector<12x256xf32>, i32 -> vector<12x256xf32>
    %127 = vector.shape_cast %8 : vector<1x256xi1> to vector<1x256xi1>
    %128 = vector.broadcast %127 : vector<1x256xi1> to vector<12x256xi1>
    %129 = arith.select %128, %98, %126 : vector<12x256xi1>, vector<12x256xf32>
    %130 = arith.minimumf %125, %129 : vector<12x256xf32>
    %c1_i32_35 = arith.constant 1 : i32
    %131 = tpu.dynamic_rotate %98 by %c1_i32_35 dim 1 : vector<12x256xf32>, i32 -> vector<12x256xf32>
    %132 = vector.shape_cast %10 : vector<1x256xi1> to vector<1x256xi1>
    %133 = vector.broadcast %132 : vector<1x256xi1> to vector<12x256xi1>
    %134 = arith.select %133, %98, %131 : vector<12x256xi1>, vector<12x256xf32>
    %c255_i32_36 = arith.constant 255 : i32
    %135 = tpu.dynamic_rotate %98 by %c255_i32_36 dim 1 : vector<12x256xf32>, i32 -> vector<12x256xf32>
    %136 = vector.shape_cast %12 : vector<1x256xi1> to vector<1x256xi1>
    %137 = vector.broadcast %136 : vector<1x256xi1> to vector<12x256xi1>
    %138 = arith.select %137, %98, %135 : vector<12x256xi1>, vector<12x256xf32>
    %139 = arith.minimumf %134, %138 : vector<12x256xf32>
    %140 = arith.minimumf %130, %139 : vector<12x256xf32>
    %141 = arith.minimumf %98, %140 : vector<12x256xf32>
    %c1_i32_37 = arith.constant 1 : i32
    %142 = tpu.dynamic_rotate %141 by %c1_i32_37 dim 1 : vector<12x256xf32>, i32 -> vector<12x256xf32>
    %143 = vector.shape_cast %10 : vector<1x256xi1> to vector<1x256xi1>
    %144 = vector.broadcast %143 : vector<1x256xi1> to vector<12x256xi1>
    %145 = arith.select %144, %141, %142 : vector<12x256xi1>, vector<12x256xf32>
    %c255_i32_38 = arith.constant 255 : i32
    %146 = tpu.dynamic_rotate %141 by %c255_i32_38 dim 1 : vector<12x256xf32>, i32 -> vector<12x256xf32>
    %147 = vector.shape_cast %12 : vector<1x256xi1> to vector<1x256xi1>
    %148 = vector.broadcast %147 : vector<1x256xi1> to vector<12x256xi1>
    %149 = arith.select %148, %141, %146 : vector<12x256xi1>, vector<12x256xf32>
    %150 = arith.maximumf %145, %149 : vector<12x256xf32>
    %151 = arith.maximumf %141, %150 : vector<12x256xf32>
    %c16_i32_39 = arith.constant 16 : i32
    %152 = tpu.dynamic_rotate %151 by %c16_i32_39 dim 1 : vector<12x256xf32>, i32 -> vector<12x256xf32>
    %153 = vector.shape_cast %6 : vector<1x256xi1> to vector<1x256xi1>
    %154 = vector.broadcast %153 : vector<1x256xi1> to vector<12x256xi1>
    %155 = arith.select %154, %151, %152 : vector<12x256xi1>, vector<12x256xf32>
    %c240_i32_40 = arith.constant 240 : i32
    %156 = tpu.dynamic_rotate %151 by %c240_i32_40 dim 1 : vector<12x256xf32>, i32 -> vector<12x256xf32>
    %157 = vector.shape_cast %8 : vector<1x256xi1> to vector<1x256xi1>
    %158 = vector.broadcast %157 : vector<1x256xi1> to vector<12x256xi1>
    %159 = arith.select %158, %151, %156 : vector<12x256xi1>, vector<12x256xf32>
    %160 = arith.maximumf %155, %159 : vector<12x256xf32>
    %161 = arith.maximumf %151, %160 : vector<12x256xf32>
    %162 = arith.subf %98, %161 : vector<12x256xf32>
    %cst_41 = arith.constant 0.000000e+00 : f32
    %163 = vector.broadcast %cst_41 : f32 to vector<12x256xf32>
    %164 = arith.maximumf %162, %163 : vector<12x256xf32>
    %165 = arith.mulf %121, %164 : vector<12x256xf32>
    %166 = arith.subf %164, %165 : vector<12x256xf32>
    %cst_42 = arith.constant 0.000000e+00 : f32
    %167 = vector.broadcast %cst_42 : f32 to vector<12x256xf32>
    %168 = arith.maximumf %166, %167 : vector<12x256xf32>
    %169 = arith.addf %121, %168 : vector<12x256xf32>
    %c16_i32_43 = arith.constant 16 : i32
    %170 = tpu.dynamic_rotate %141 by %c16_i32_43 dim 1 : vector<12x256xf32>, i32 -> vector<12x256xf32>
    %171 = vector.shape_cast %6 : vector<1x256xi1> to vector<1x256xi1>
    %172 = vector.broadcast %171 : vector<1x256xi1> to vector<12x256xi1>
    %173 = arith.select %172, %141, %170 : vector<12x256xi1>, vector<12x256xf32>
    %c240_i32_44 = arith.constant 240 : i32
    %174 = tpu.dynamic_rotate %141 by %c240_i32_44 dim 1 : vector<12x256xf32>, i32 -> vector<12x256xf32>
    %175 = vector.shape_cast %8 : vector<1x256xi1> to vector<1x256xi1>
    %176 = vector.broadcast %175 : vector<1x256xi1> to vector<12x256xi1>
    %177 = arith.select %176, %141, %174 : vector<12x256xi1>, vector<12x256xf32>
    %178 = arith.minimumf %173, %177 : vector<12x256xf32>
    %c1_i32_45 = arith.constant 1 : i32
    %179 = tpu.dynamic_rotate %141 by %c1_i32_45 dim 1 : vector<12x256xf32>, i32 -> vector<12x256xf32>
    %180 = vector.shape_cast %10 : vector<1x256xi1> to vector<1x256xi1>
    %181 = vector.broadcast %180 : vector<1x256xi1> to vector<12x256xi1>
    %182 = arith.select %181, %141, %179 : vector<12x256xi1>, vector<12x256xf32>
    %c255_i32_46 = arith.constant 255 : i32
    %183 = tpu.dynamic_rotate %141 by %c255_i32_46 dim 1 : vector<12x256xf32>, i32 -> vector<12x256xf32>
    %184 = vector.shape_cast %12 : vector<1x256xi1> to vector<1x256xi1>
    %185 = vector.broadcast %184 : vector<1x256xi1> to vector<12x256xi1>
    %186 = arith.select %185, %141, %183 : vector<12x256xi1>, vector<12x256xf32>
    %187 = arith.minimumf %182, %186 : vector<12x256xf32>
    %188 = arith.minimumf %178, %187 : vector<12x256xf32>
    %189 = arith.minimumf %141, %188 : vector<12x256xf32>
    %c1_i32_47 = arith.constant 1 : i32
    %190 = tpu.dynamic_rotate %189 by %c1_i32_47 dim 1 : vector<12x256xf32>, i32 -> vector<12x256xf32>
    %191 = vector.shape_cast %10 : vector<1x256xi1> to vector<1x256xi1>
    %192 = vector.broadcast %191 : vector<1x256xi1> to vector<12x256xi1>
    %193 = arith.select %192, %189, %190 : vector<12x256xi1>, vector<12x256xf32>
    %c255_i32_48 = arith.constant 255 : i32
    %194 = tpu.dynamic_rotate %189 by %c255_i32_48 dim 1 : vector<12x256xf32>, i32 -> vector<12x256xf32>
    %195 = vector.shape_cast %12 : vector<1x256xi1> to vector<1x256xi1>
    %196 = vector.broadcast %195 : vector<1x256xi1> to vector<12x256xi1>
    %197 = arith.select %196, %189, %194 : vector<12x256xi1>, vector<12x256xf32>
    %198 = arith.maximumf %193, %197 : vector<12x256xf32>
    %199 = arith.maximumf %189, %198 : vector<12x256xf32>
    %c16_i32_49 = arith.constant 16 : i32
    %200 = tpu.dynamic_rotate %199 by %c16_i32_49 dim 1 : vector<12x256xf32>, i32 -> vector<12x256xf32>
    %201 = vector.shape_cast %6 : vector<1x256xi1> to vector<1x256xi1>
    %202 = vector.broadcast %201 : vector<1x256xi1> to vector<12x256xi1>
    %203 = arith.select %202, %199, %200 : vector<12x256xi1>, vector<12x256xf32>
    %c240_i32_50 = arith.constant 240 : i32
    %204 = tpu.dynamic_rotate %199 by %c240_i32_50 dim 1 : vector<12x256xf32>, i32 -> vector<12x256xf32>
    %205 = vector.shape_cast %8 : vector<1x256xi1> to vector<1x256xi1>
    %206 = vector.broadcast %205 : vector<1x256xi1> to vector<12x256xi1>
    %207 = arith.select %206, %199, %204 : vector<12x256xi1>, vector<12x256xf32>
    %208 = arith.maximumf %203, %207 : vector<12x256xf32>
    %209 = arith.maximumf %199, %208 : vector<12x256xf32>
    %210 = arith.subf %141, %209 : vector<12x256xf32>
    %cst_51 = arith.constant 0.000000e+00 : f32
    %211 = vector.broadcast %cst_51 : f32 to vector<12x256xf32>
    %212 = arith.maximumf %210, %211 : vector<12x256xf32>
    %213 = arith.mulf %169, %212 : vector<12x256xf32>
    %214 = arith.subf %212, %213 : vector<12x256xf32>
    %cst_52 = arith.constant 0.000000e+00 : f32
    %215 = vector.broadcast %cst_52 : f32 to vector<12x256xf32>
    %216 = arith.maximumf %214, %215 : vector<12x256xf32>
    %217 = arith.addf %169, %216 : vector<12x256xf32>
    %c16_i32_53 = arith.constant 16 : i32
    %218 = tpu.dynamic_rotate %189 by %c16_i32_53 dim 1 : vector<12x256xf32>, i32 -> vector<12x256xf32>
    %219 = vector.shape_cast %6 : vector<1x256xi1> to vector<1x256xi1>
    %220 = vector.broadcast %219 : vector<1x256xi1> to vector<12x256xi1>
    %221 = arith.select %220, %189, %218 : vector<12x256xi1>, vector<12x256xf32>
    %c240_i32_54 = arith.constant 240 : i32
    %222 = tpu.dynamic_rotate %189 by %c240_i32_54 dim 1 : vector<12x256xf32>, i32 -> vector<12x256xf32>
    %223 = vector.shape_cast %8 : vector<1x256xi1> to vector<1x256xi1>
    %224 = vector.broadcast %223 : vector<1x256xi1> to vector<12x256xi1>
    %225 = arith.select %224, %189, %222 : vector<12x256xi1>, vector<12x256xf32>
    %226 = arith.minimumf %221, %225 : vector<12x256xf32>
    %c1_i32_55 = arith.constant 1 : i32
    %227 = tpu.dynamic_rotate %189 by %c1_i32_55 dim 1 : vector<12x256xf32>, i32 -> vector<12x256xf32>
    %228 = vector.shape_cast %10 : vector<1x256xi1> to vector<1x256xi1>
    %229 = vector.broadcast %228 : vector<1x256xi1> to vector<12x256xi1>
    %230 = arith.select %229, %189, %227 : vector<12x256xi1>, vector<12x256xf32>
    %c255_i32_56 = arith.constant 255 : i32
    %231 = tpu.dynamic_rotate %189 by %c255_i32_56 dim 1 : vector<12x256xf32>, i32 -> vector<12x256xf32>
    %232 = vector.shape_cast %12 : vector<1x256xi1> to vector<1x256xi1>
    %233 = vector.broadcast %232 : vector<1x256xi1> to vector<12x256xi1>
    %234 = arith.select %233, %189, %231 : vector<12x256xi1>, vector<12x256xf32>
    %235 = arith.minimumf %230, %234 : vector<12x256xf32>
    %236 = arith.minimumf %226, %235 : vector<12x256xf32>
    %237 = arith.minimumf %189, %236 : vector<12x256xf32>
    %c1_i32_57 = arith.constant 1 : i32
    %238 = tpu.dynamic_rotate %237 by %c1_i32_57 dim 1 : vector<12x256xf32>, i32 -> vector<12x256xf32>
    %239 = vector.shape_cast %10 : vector<1x256xi1> to vector<1x256xi1>
    %240 = vector.broadcast %239 : vector<1x256xi1> to vector<12x256xi1>
    %241 = arith.select %240, %237, %238 : vector<12x256xi1>, vector<12x256xf32>
    %c255_i32_58 = arith.constant 255 : i32
    %242 = tpu.dynamic_rotate %237 by %c255_i32_58 dim 1 : vector<12x256xf32>, i32 -> vector<12x256xf32>
    %243 = vector.shape_cast %12 : vector<1x256xi1> to vector<1x256xi1>
    %244 = vector.broadcast %243 : vector<1x256xi1> to vector<12x256xi1>
    %245 = arith.select %244, %237, %242 : vector<12x256xi1>, vector<12x256xf32>
    %246 = arith.maximumf %241, %245 : vector<12x256xf32>
    %247 = arith.maximumf %237, %246 : vector<12x256xf32>
    %c16_i32_59 = arith.constant 16 : i32
    %248 = tpu.dynamic_rotate %247 by %c16_i32_59 dim 1 : vector<12x256xf32>, i32 -> vector<12x256xf32>
    %249 = vector.shape_cast %6 : vector<1x256xi1> to vector<1x256xi1>
    %250 = vector.broadcast %249 : vector<1x256xi1> to vector<12x256xi1>
    %251 = arith.select %250, %247, %248 : vector<12x256xi1>, vector<12x256xf32>
    %c240_i32_60 = arith.constant 240 : i32
    %252 = tpu.dynamic_rotate %247 by %c240_i32_60 dim 1 : vector<12x256xf32>, i32 -> vector<12x256xf32>
    %253 = vector.shape_cast %8 : vector<1x256xi1> to vector<1x256xi1>
    %254 = vector.broadcast %253 : vector<1x256xi1> to vector<12x256xi1>
    %255 = arith.select %254, %247, %252 : vector<12x256xi1>, vector<12x256xf32>
    %256 = arith.maximumf %251, %255 : vector<12x256xf32>
    %257 = arith.maximumf %247, %256 : vector<12x256xf32>
    %258 = arith.subf %189, %257 : vector<12x256xf32>
    %cst_61 = arith.constant 0.000000e+00 : f32
    %259 = vector.broadcast %cst_61 : f32 to vector<12x256xf32>
    %260 = arith.maximumf %258, %259 : vector<12x256xf32>
    %261 = arith.mulf %217, %260 : vector<12x256xf32>
    %262 = arith.subf %260, %261 : vector<12x256xf32>
    %cst_62 = arith.constant 0.000000e+00 : f32
    %263 = vector.broadcast %cst_62 : f32 to vector<12x256xf32>
    %264 = arith.maximumf %262, %263 : vector<12x256xf32>
    %265 = arith.addf %217, %264 : vector<12x256xf32>
    %266 = vector.extract_strided_slice %265 {offsets = [0, 0], sizes = [6, 256], strides = [1, 1]} : vector<12x256xf32> to vector<6x256xf32>
    %267 = vector.extract_strided_slice %265 {offsets = [6, 0], sizes = [6, 256], strides = [1, 1]} : vector<12x256xf32> to vector<6x256xf32>
    %c3 = arith.constant 3 : index
    %268 = memref.load %arg4[%c3] : memref<8xf32, #tpu.memory_space<smem>>
    %269 = arith.mulf %266, %55 : vector<6x256xf32>
    %270 = vector.shape_cast %269 : vector<6x256xf32> to vector<1x6x256xf32>
    %cst_63 = arith.constant dense<0.000000e+00> : vector<1xf32>
    %271 = vector.multi_reduction <add>, %270, %cst_63 [1, 2] : vector<1x6x256xf32> to vector<1xf32>
    %272 = vector.shape_cast %271 : vector<1xf32> to vector<1x1x1xf32>
    %273 = vector.extract %272[0, 0, 0] : f32 from vector<1x1x1xf32>
    %274 = arith.addf %268, %273 : f32
    %c3_64 = arith.constant 3 : index
    %275 = memref.load %arg4[%c3_64] : memref<8xf32, #tpu.memory_space<smem>>
    memref.store %274, %arg4[%c3_64] : memref<8xf32, #tpu.memory_space<smem>>
    %c4 = arith.constant 4 : index
    %276 = memref.load %arg4[%c4] : memref<8xf32, #tpu.memory_space<smem>>
    %277 = vector.shape_cast %266 : vector<6x256xf32> to vector<1x6x256xf32>
    %cst_65 = arith.constant dense<0.000000e+00> : vector<1xf32>
    %278 = vector.multi_reduction <add>, %277, %cst_65 [1, 2] : vector<1x6x256xf32> to vector<1xf32>
    %279 = vector.shape_cast %278 : vector<1xf32> to vector<1x1x1xf32>
    %280 = vector.extract %279[0, 0, 0] : f32 from vector<1x1x1xf32>
    %281 = arith.addf %276, %280 : f32
    %c4_66 = arith.constant 4 : index
    %282 = memref.load %arg4[%c4_66] : memref<8xf32, #tpu.memory_space<smem>>
    memref.store %281, %arg4[%c4_66] : memref<8xf32, #tpu.memory_space<smem>>
    %c5 = arith.constant 5 : index
    %283 = memref.load %arg4[%c5] : memref<8xf32, #tpu.memory_space<smem>>
    %284 = arith.mulf %267, %54 : vector<6x256xf32>
    %285 = vector.shape_cast %284 : vector<6x256xf32> to vector<1x6x256xf32>
    %cst_67 = arith.constant dense<0.000000e+00> : vector<1xf32>
    %286 = vector.multi_reduction <add>, %285, %cst_67 [1, 2] : vector<1x6x256xf32> to vector<1xf32>
    %287 = vector.shape_cast %286 : vector<1xf32> to vector<1x1x1xf32>
    %288 = vector.extract %287[0, 0, 0] : f32 from vector<1x1x1xf32>
    %289 = arith.addf %283, %288 : f32
    %c5_68 = arith.constant 5 : index
    %290 = memref.load %arg4[%c5_68] : memref<8xf32, #tpu.memory_space<smem>>
    memref.store %289, %arg4[%c5_68] : memref<8xf32, #tpu.memory_space<smem>>
    %c6 = arith.constant 6 : index
    %291 = memref.load %arg4[%c6] : memref<8xf32, #tpu.memory_space<smem>>
    %292 = vector.shape_cast %267 : vector<6x256xf32> to vector<1x6x256xf32>
    %cst_69 = arith.constant dense<0.000000e+00> : vector<1xf32>
    %293 = vector.multi_reduction <add>, %292, %cst_69 [1, 2] : vector<1x6x256xf32> to vector<1xf32>
    %294 = vector.shape_cast %293 : vector<1xf32> to vector<1x1x1xf32>
    %295 = vector.extract %294[0, 0, 0] : f32 from vector<1x1x1xf32>
    %296 = arith.addf %291, %295 : f32
    %c6_70 = arith.constant 6 : index
    %297 = memref.load %arg4[%c6_70] : memref<8xf32, #tpu.memory_space<smem>>
    memref.store %296, %arg4[%c6_70] : memref<8xf32, #tpu.memory_space<smem>>
    return
  }
  func.func @transform_0(%arg0: i32) -> (i32, i32, i32) {
    %c0_i32 = arith.constant 0 : i32
    %c0_i32_0 = arith.constant 0 : i32
    %c0_i32_1 = arith.constant 0 : i32
    return %arg0, %c0_i32, %c0_i32_0 : i32, i32, i32
  }
  func.func @transform_1(%arg0: i32) -> (i32, i32, i32) {
    %c0_i32 = arith.constant 0 : i32
    %c0_i32_0 = arith.constant 0 : i32
    %c0_i32_1 = arith.constant 0 : i32
    return %arg0, %c0_i32, %c0_i32_0 : i32, i32, i32
  }
  func.func @transform_2(%arg0: i32) -> (i32, i32) {
    %c0_i32 = arith.constant 0 : i32
    %c0_i32_0 = arith.constant 0 : i32
    %c0_i32_1 = arith.constant 0 : i32
    return %c0_i32, %c0_i32_0 : i32, i32
  }
  func.func @transform_3(%arg0: i32) -> i32 {
    %c0_i32 = arith.constant 0 : i32
    %c0_i32_0 = arith.constant 0 : i32
    return %c0_i32 : i32
  }
}

</mosaic_0001>

<bundles_post_ra>
// kernel: tpu_custom_call.1
= control target key start
LH: loop header
LB: loop body
LE: loop exit
PB: predicated region body
PF: predicated region fallthrough
CT: control target
= control target key end

     0   :  { %8 = vsyncpa [#allocation3], 0  ;;  %s2323_s0 = inlined_call_operand.hbm [shape: f32[2,4,256], index: 0, kind: input, shape index: {}]   ;;  %s2324_s1 = inlined_call_operand.hbm [shape: s32[2,1,256], index: 1, kind: input, shape index: {}]   ;;  %s2325_s2 = inlined_call_operand.vmem [shape: s32[1,256], index: 2, kind: input, shape index: {}]   ;;  %s2326_s3 = inlined_call_operand.hbm [shape: f32[8], index: 3, kind: output, shape index: {}]  }
   0x1   :  { %9 = vsyncpa [#allocation6], 0 }
   0x2   :  { %10 = vsyncpa [#allocation4], 0  ;;  %s1306_s12 = smov [#allocation2]   ;;  %s1246_s16 = scalar_lea.hbm %s2323_s0, 256 }
   0x3   :  { %s16_s13 = sshll.u32 %s1306_s12, 4  ;;  %p1247_p0 = scmp.ne.s32.totalorder %s2323_s0, %s1246_s16  ;;  %s17_s13 = int_to_ptr.vmem [resolvable:$true] %s16_s13 }
   0x4   :  { %p1250_p1 = scmp.lt.u32.totalorder %s1246_s16, %s2323_s0 }
   0x6   :  { %p1252_p2 = pnand %p1250_p1, %p1247_p0 }
   0x8   :  { %1255 = shalt.err (!%p1252_p2)
}
   0x9   :  { %s1256_s21 = scalar_lea.vmem %s17_s13, 256  ;;  %p1261_p4 = scmp.lt.s32.totalorder %s17_s13, %s17_s13 }
   0xa   :  { %p1257_p3 = scmp.ne.s32.totalorder %s17_s13, %s1256_s21  ;;  %p1262_p5 = scmp.lt.s32.totalorder %s1256_s21, %s1256_s21 }
   0xc   :  { %p1263_p6 = por %p1262_p5, %p1261_p4 }
   0xe   :  { %p1264_p7 = pnand %p1263_p6, %p1257_p3 }
  0x10   :  { %1267 = shalt.err (!%p1264_p7)
}
  0x11   :  { %s1307_s22 = smov 128   ;;  %s1308_s23 = smov 8  }
  0x12   :  { %22 = dma.hbm_to_vmem [thread:$0]  %s2323_s0, 256, %s17_s13, [#allocation3], %s1307_s22, %s1307_s22, %s1308_s23  }
  0x13   :  { %s1309_s26 = smov [#allocation5]   ;;  %s1268_s30 = scalar_lea.hbm %s2324_s1, 64 }
  0x14   :  { %s28_s27 = sshll.u32 %s1309_s26, 4  ;;  %p1269_p8 = scmp.ne.s32.totalorder %s2324_s1, %s1268_s30  ;;  %s29_s27 = int_to_ptr.vmem [resolvable:$true] %s28_s27 }
  0x15   :  { %p1272_p9 = scmp.lt.u32.totalorder %s1268_s30, %s2324_s1 }
  0x17   :  { %p1274_p10 = pnand %p1272_p9, %p1269_p8 }
  0x19   :  { %1277 = shalt.err (!%p1274_p10)
}
  0x1a   :  { %s1278_s8 = scalar_lea.vmem %s29_s27, 64  ;;  %p1283_p12 = scmp.lt.s32.totalorder %s29_s27, %s29_s27 }
  0x1b   :  { %p1279_p11 = scmp.ne.s32.totalorder %s29_s27, %s1278_s8  ;;  %p1284_p13 = scmp.lt.s32.totalorder %s1278_s8, %s1278_s8 }
  0x1d   :  { %p1285_p0 = por %p1284_p13, %p1283_p12 }
  0x1f   :  { %p1286_p1 = pnand %p1285_p0, %p1279_p11 }
  0x21   :  { %1289 = shalt.err (!%p1286_p1)
}
  0x22   :  { %s1310_s0 = smov 32   ;;  %s1311_s9 = smov 2  }
  0x23   :  { %34 = dma.hbm_to_vmem [thread:$0]  %s2324_s1, 64, %s29_s27, [#allocation6], %s1310_s0, %s1310_s0, %s1311_s9  }
  0x24   :  { %1300 = dma.done.wait [#allocation3], 256  }
  0x25   :  { %1301 = vsyncadd [#allocation3], 4294967040 }
  0x26   :  { %1302 = dma.done.wait [#allocation6], 64  }
  0x27   :  { %1303 = vsyncadd [#allocation6], 4294967232  ;;  %v63_v0 = vlaneseq  ;;  %vm81_vm0 = vcmask 1043456   ;;  %v77_v5 = vld [vmem:[#allocation5] sm:$0x3]  ;;  %vm221_vm1 = vcmask 1042432  }
  0x28   :  { %v145_v6 = vld [vmem:[#allocation5 + $0x2] sm:$0x3]  ;;  %v76_v7 = vld [vmem:[#allocation2] sm:$0xff]  ;;  %v143_v12 = vld [vmem:[#allocation2 + $0x8] sm:$0xff]  ;;  %v1312_v17 = vmov 0.0   ;;  %s1313_s1 = smov 16  }
  0x29   :  { %v74_v1 = vshrl.u32 %v63_v0, 7  ;;  %v79_v13 = vcombine.high %v76_v7, %v76_v7  ;;  %v82_v14 = vsel %vm81_vm0, %v76_v7, -inf  ;;  %v147_v15 = vcombine.high %v143_v12, %v143_v12  ;;  %s1314_s12 = smov 1   ;;  %s1315_s13 = smov 112  }
  0x2a   :  { %v149_v16 = vsel %vm81_vm0, %v143_v12, -inf  ;;  %v83_v24 = vrot.slane %v82_v14, 4  ;;  %vm235_vm6 = vcmask 1045504   ;;  %s1316_s14 = smov 127   ;;  %s1290_s26 = scalar_lea.hbm %s2326_s3, 16 }
  0x2b   :  { %v1365_v2 = vsub.s32 0, %v74_v1  ;;  %v1367_v3 = vsub.s32 1, %v74_v1  ;;  %v75_v4 = vadd.s32 1, %v74_v1  ;;  %v89_v25 = vsel %vm81_vm0, %v79_v13, -inf  ;;  %p1291_p2 = scmp.ne.s32.totalorder %s2326_s3, %s1290_s26  ;;  %p1294_p3 = scmp.lt.u32.totalorder %s1290_s26, %s2326_s3 }
  0x2c   :  { %v90_v26 = vrot.slane %v89_v25, 4  ;;  %v150_v27 = vrot.slane %v149_v16, 4  ;;  %v156_v28 = vsel %vm81_vm0, %v147_v15, -inf  ;;  %v84_v31 = vmax.f32 %v82_v14, %v83_v24 }
  0x2d   :  { %v131_v8 = vrot.slane %v77_v5, %v1365_v2  ;;  %v135_v9 = vrot.slane %v77_v5, %v1367_v3  ;;  %v198_v10 = vrot.slane %v145_v6, %v1365_v2  ;;  %v202_v11 = vrot.slane %v145_v6, %v1367_v3  ;;  %p1296_p4 = pnand %p1294_p3, %p1291_p2 }
  0x2e   :  { %v157_v32 = vrot.slane %v156_v28, 4  ;;  %v91_v35 = vmax.f32 %v89_v25, %v90_v26  ;;  %v151_v36 = vmax.f32 %v149_v16, %v150_v27  ;;  %v85_v37 = vrot.slane %v84_v31, 2 }
  0x2f   :  { %vm136_vm2 = vcmp.eq.s32.totalorder %v75_v4, %v131_v8  ;;  %vm137_vm3 = vcmp.eq.s32.totalorder %v75_v4, %v135_v9  ;;  %vm203_vm4 = vcmp.eq.s32.totalorder %v75_v4, %v198_v10  ;;  %vm204_vm5 = vcmp.eq.s32.totalorder %v75_v4, %v202_v11 }
  0x30   :  { %v1064_v18 = vsel %vm136_vm2, 1.0, %v1312_v17  ;;  %v1065_v19 = vsel %vm137_vm3, 1.0, %v1312_v17  ;;  %v1066_v20 = vsel %vm203_vm4, 1.0, %v1312_v17  ;;  %v1067_v21 = vsel %vm204_vm5, 1.0, %v1312_v17 }
  0x31   :  { %v226_v22 = vrot.slane %v1066_v20, 5  ;;  %v227_v23 = vrot.slane %v1067_v21, 5  ;;  %v158_v38 = vmax.f32 %v156_v28, %v157_v32  ;;  %v92_v40 = vrot.slane %v91_v35, 2 }
  0x32   :  { %v86_v41 = vmax.f32 %v84_v31, %v85_v37  ;;  %v152_v42 = vrot.slane %v151_v36, 2  ;;  %vm997_vm2 = vcmask 1041408  }
  0x33   :  { %v1378_v29 = vsel %vm221_vm1, %v1064_v18, %v226_v22  ;;  %v1381_v30 = vsel %vm221_vm1, %v1065_v19, %v227_v23  ;;  %v159_v43 = vrot.slane %v158_v38, 2  ;;  %v93_v44 = vmax.f32 %v91_v35, %v92_v40 }
  0x34   :  { %2342 = vst [vmem:[#allocation11_spill] sm:$0xff] %v1378_v29  ;;  %2343 = vst [vmem:[#allocation12_spill] sm:$0xff] %v1381_v30  ;;  %v1384_v33 = vrot.slane %v1378_v29, 2  ;;  %v1387_v34 = vrot.slane %v1381_v30, 2  ;;  %v87_v45 = vrot.slane %v86_v41, 1  ;;  %v153_v46 = vmax.f32 %v151_v36, %v152_v42 }
  0x35   :  { %v160_v47 = vmax.f32 %v158_v38, %v159_v43  ;;  %v94_v48 = vrot.slane %v93_v44, 1 }
  0x36   :  { %2344 = vst [vmem:[#allocation13_spill] sm:$0xff] %v1384_v33  ;;  %2345 = vst [vmem:[#allocation14_spill] sm:$0xff] %v1387_v34  ;;  %v1391_v39 = vpack.i.bf16 %v1387_v34, %v1384_v33  ;;  %v88_v49 = vmax.f32 %v86_v41, %v87_v45  ;;  %v154_v50 = vrot.slane %v153_v46, 1 }
  0x37   :  { %v161_v51 = vrot.slane %v160_v47, 1  ;;  %v95_v52 = vmax.f32 %v93_v44, %v94_v48 }
  0x38   :  { %1103 = vrot.lane.b32.xlu0 %v1391_v39, %s1313_s1  ;;  %1113 = vrot.lane.b32.xlu1 %v1391_v39, %s1314_s12  ;;  %v155_v53 = vmax.f32 %v153_v46, %v154_v50 }
  0x39   :  { %v162_v54 = vmax.f32 %v160_v47, %v161_v51  ;;  %v98_v55 = vcombine.low %v88_v49, %v95_v52 }
  0x3b   :  { %v165_v56 = vcombine.low %v155_v53, %v162_v54  ;;  %v100_v57 = vsub.f32 %v76_v7, %v98_v55 }
  0x3c   :  { %1108 = vrot.lane.b32.xlu0 %v1391_v39, %s1315_s13 }
  0x3d   :  { %v167_v58 = vsub.f32 %v143_v12, %v165_v56  ;;  %v101_v59 = vmul.f32 1.442695, %v100_v57 }
  0x3f   :  { %v168_v60 = vmul.f32 1.442695, %v167_v58  ;;  %1234 = vpow2.f32 %v101_v59 }
  0x41   :  { %1236 = vpow2.f32 %v168_v60  ;;  %v66_v60 = vld [vmem:[%s2325_s2] sm:$0x3]  ;;  %s1318_s2 = smov 0.0  }
  0x42   :  { %vm71_vm7 = vcmp.eq.s32.totalorder %v66_v60, 0  ;;  %vm72_vm8 = vcmp.eq.s32.totalorder %v66_v60, 15  ;;  %62 = sst [smem:[#allocation7 + $0x7]] %s1318_s2 }
  0x49   :  { %v1235_v61 = vpop.eup %1234 }
  0x4a   :  { %v104_v63 = vcombine.high %v1235_v61, %v1235_v61  ;;  %v106_v1 = vsel %vm81_vm0, %v1235_v61, 0.0 }
  0x4b   :  { %v1237_v62 = vpop.eup %1236  ;;  %v107_v4 = vrot.slane %v106_v1, 4 }
  0x4c   :  { %v171_v5 = vcombine.high %v1237_v62, %v1237_v62  ;;  %v173_v6 = vsel %vm81_vm0, %v1237_v62, 0.0  ;;  %v113_v8 = vsel %vm81_vm0, %v104_v63, 0.0  ;;  %v1317_v63 = vmov 0  }
  0x4d   :  { %v174_v9 = vrot.slane %v173_v6, 4  ;;  %v108_v10 = vadd.f32 %v107_v4, %v106_v1  ;;  %v114_v11 = vrot.slane %v113_v8, 4  ;;  %v349_v1 = vsel %vm71_vm7, 1, %v1317_v63 }
  0x4e   :  { %v180_v7 = vsel %vm81_vm0, %v171_v5, 0.0 }
  0x4f   :  { %v175_v12 = vadd.f32 %v174_v9, %v173_v6  ;;  %v181_v13 = vrot.slane %v180_v7, 4  ;;  %v109_v14 = vrot.slane %v108_v10, 2  ;;  %v115_v15 = vadd.f32 %v114_v11, %v113_v8 }
  0x50   :  { %v377_v9 = vsel %vm72_vm8, 1, %v1317_v63 }
  0x51   :  { %v176_v16 = vrot.slane %v175_v12, 2  ;;  %v182_v17 = vadd.f32 %v181_v13, %v180_v7  ;;  %v110_v18 = vadd.f32 %v109_v14, %v108_v10  ;;  %v116_v19 = vrot.slane %v115_v15, 2 }
  0x52   :  { %v353_v13 = vrot.slane %v349_v1, %v1365_v2  ;;  %v357_v14 = vrot.slane %v349_v1, %v1367_v3 }
  0x53   :  { %v177_v20 = vadd.f32 %v176_v16, %v175_v12  ;;  %v183_v21 = vrot.slane %v182_v17, 2  ;;  %v111_v22 = vrot.slane %v110_v18, 1  ;;  %v117_v23 = vadd.f32 %v116_v19, %v115_v15 }
  0x54   :  { %vm1467_vm14 = vcmp.eq.s32.totalorder %v353_v13, 1  ;;  %vm1471_vm15 = vcmp.eq.s32.totalorder %v357_v14, 1 }
  0x55   :  { %v178_v24 = vrot.slane %v177_v20, 1  ;;  %v184_v25 = vadd.f32 %v183_v21, %v182_v17  ;;  %v112_v26 = vadd.f32 %v111_v22, %v110_v18  ;;  %v118_v27 = vrot.slane %v117_v23, 1 }
  0x56   :  { %v381_v17 = vrot.slane %v377_v9, %v1365_v2  ;;  %v385_v18 = vrot.slane %v377_v9, %v1367_v3  ;;  %v2367_v3 = vld [vmem:[#allocation11_spill] sm:$0xff] }
  0x57   :  { %v179_v28 = vadd.f32 %v178_v24, %v177_v20  ;;  %v185_v31 = vrot.slane %v184_v25, 1  ;;  %v119_v32 = vadd.f32 %v118_v27, %v117_v23  ;;  %1238 = vrcp.f32 %v112_v26 }
  0x58   :  { %vm1480_vm0 = vcmp.eq.s32.totalorder %v381_v17, 1 }
  0x59   :  { %v186_v35 = vadd.f32 %v185_v31, %v184_v25  ;;  %1240 = vrcp.f32 %v179_v28 }
  0x5a   :  { %1242 = vrcp.f32 %v119_v32 }
  0x5b   :  { %1244 = vrcp.f32 %v186_v35 }
  0x61   :  { %v1239_v36 = vpop.eup %1238 }
  0x63   :  { %v1241_v37 = vpop.eup %1240 }
  0x64   :  { %v1243_v38 = vpop.eup %1242 }
  0x65   :  { %v1245_v40 = vpop.eup %1244  ;;  %v124_v41 = vcombine.low %v1239_v36, %v1243_v38 }
  0x66   :  { %v191_v42 = vcombine.low %v1241_v37, %v1245_v40 }
  0x67   :  { %v125_v43 = vrot.slane %v124_v41, 7 }
  0x68   :  { %v192_v44 = vrot.slane %v191_v42, 7 }
  0x69   :  { %v127_v45 = vmul.f32 %v1235_v61, %v125_v43 }
  0x6a   :  { %v194_v46 = vmul.f32 %v1237_v62, %v192_v44 }
  0x6b   :  { %v211_v47 = vrot.slane %v127_v45, 1  ;;  %v210_v48 = vcombine.high %v127_v45, %v127_v45 }
  0x6c   :  { %v217_v49 = vrot.slane %v194_v46, 6  ;;  %v216_v50 = vcombine.high %v194_v46, %v194_v46 }
  0x6d   :  { %v212_v52 = vrot.slane %v210_v48, 1 }
  0x6e   :  { %v1404_v51 = vsel %vm221_vm1, %v211_v47, %v217_v49  ;;  %v218_v53 = vrot.slane %v216_v50, 6 }
  0x6f   :  { %2346 = vst [vmem:[#allocation15_spill] sm:$0xff] %v1404_v51  ;;  %v1409_v54 = vsel %vm235_vm6, %v1404_v51, %v1384_v33 }
  0x70   :  { %2347 = vst [vmem:[#allocation16_spill] sm:$0xff] %v1409_v54  ;;  %311 = vrot.lane.b32.xlu1 %v1409_v54, %s1315_s13  ;;  %291 = vrot.lane.b32.xlu0 %v1409_v54, %s1313_s1  ;;  %v1416_v55 = vsel %vm221_vm1, %v212_v52, %v218_v53  ;;  %vm1484_vm1 = vcmp.eq.s32.totalorder %v385_v18, 1 }
  0x71   :  { %2348 = vst [vmem:[#allocation17_spill] sm:$0xff] %v1416_v55  ;;  %v1425_v56 = vsel %vm235_vm6, %v1416_v55, %v1387_v34 }
  0x72   :  { %2349 = vst [vmem:[#allocation18_spill] sm:$0xff] %v1425_v56 }
  0x74   :  { %364 = vrot.lane.b32.xlu1 %v1409_v54, %s1316_s14  ;;  %336 = vrot.lane.b32.xlu0 %v1409_v54, %s1314_s12 }
  0x78   :  { %340 = vrot.lane.b32.xlu0 %v1425_v56, %s1314_s12  ;;  %295 = vrot.lane.b32.xlu1 %v1425_v56, %s1313_s1 }
  0x7c   :  { %1118 = vrot.lane.b32.xlu0 %v1391_v39, %s1316_s14  ;;  %315 = vrot.lane.b32.xlu1 %v1425_v56, %s1315_s13  ;;  %v1445_v39 = vand.u32 127, %v63_v0 }
  0x7e   :  { %vm67_vm9 = vcmp.lt.s32.totalorder %v1445_v39, 16  ;;  %vm319_vm10 = vcmp.lt.s32.totalorder %v1445_v39, 112  ;;  %v1450_v10 = vadd.s32 128, %v1445_v39  ;;  %vm344_vm11 = vcmp.lt.s32.totalorder %v1445_v39, 1 }
  0x7f   :  { %vm372_vm12 = vcmp.lt.s32.totalorder %v1445_v39, 127 }
  0x80   :  { %368 = vrot.lane.b32.xlu1 %v1425_v56, %s1316_s14  ;;  %vm70_vm13 = vcmp.ge.s32.totalorder %v1450_v10, 240 }
  0xaa   :  { %v1104_v57 = vpop.permute.xlu0 %1103  ;;  %v1114_v58 = vpop.permute.xlu1 %1113 }
  0xab   :  { %v1106_v6 = vunpack.i.h.bf16 %v1104_v57  ;;  %v1105_v8 = vunpack.i.l.bf16 %v1104_v57  ;;  %v1116_v12 = vunpack.i.h.bf16 %v1114_v58  ;;  %v1115_v0 = vunpack.i.l.bf16 %v1114_v58 }
  0xad   :  { %v302_v19 = vsel %vm67_vm9, %v1106_v6, %v1105_v8  ;;  %v346_v21 = vsel %vm344_vm11, %v1115_v0, %v1116_v12  ;;  %v348_v22 = vsel %vm344_vm11, %v1116_v12, %v1115_v0  ;;  %v300_v31 = vsel %vm67_vm9, %v1105_v8, %v1106_v6 }
  0xae   :  { %v1109_v59 = vpop.permute.xlu0 %1108  ;;  %v309_v23 = vsel %vm67_vm9, %v1384_v33, %v302_v19  ;;  %v362_v37 = vsel %vm1467_vm14, %v1384_v33, %v348_v22  ;;  %v363_v38 = vsel %vm1471_vm15, %v1387_v34, %v346_v21 }
  0xaf   :  { %v1111_v11 = vunpack.i.h.bf16 %v1109_v59  ;;  %v1110_v7 = vunpack.i.l.bf16 %v1109_v59 }
  0xb1   :  { %v323_v20 = vsel %vm319_vm10, %v1111_v11, %v1110_v7  ;;  %v321_v24 = vsel %vm319_vm10, %v1110_v7, %v1111_v11 }
  0xb2   :  { %v331_v32 = vsel %vm70_vm13, %v1387_v34, %v323_v20  ;;  %v334_v40 = vmin.f32 %v309_v23, %v321_v24 }
  0xb3   :  { %v335_v44 = vmin.f32 %v300_v31, %v331_v32 }
  0xe2   :  { %v1440_v61 = vpop.permute.xlu1 %311  ;;  %v1442_v62 = vpop.permute.xlu0 %291 }
  0xe6   :  { %v365_v4 = vpop.permute.xlu1 %364  ;;  %v337_v5 = vpop.permute.xlu0 %336 }
  0xea   :  { %v341_v15 = vpop.permute.xlu0 %340  ;;  %v296_v16 = vpop.permute.xlu1 %295 }
  0xeb   :  { %v347_v41 = vsel %vm344_vm11, %v341_v15, %v337_v5  ;;  %v301_v45 = vsel %vm67_vm9, %v296_v16, %v1442_v62  ;;  %v345_v57 = vsel %vm344_vm11, %v337_v5, %v341_v15  ;;  %v299_v15 = vsel %vm67_vm9, %v1442_v62, %v296_v16 }
  0xec   :  { %v360_v58 = vsel %vm1467_vm14, %v1409_v54, %v347_v41  ;;  %v307_v5 = vsel %vm67_vm9, %v1409_v54, %v301_v45 }
  0xee   :  { %v1119_v25 = vpop.permute.xlu0 %1118  ;;  %v316_v28 = vpop.permute.xlu1 %315 }
  0xef   :  { %v1121_v35 = vunpack.i.h.bf16 %v1119_v25  ;;  %v1120_v36 = vunpack.i.l.bf16 %v1119_v25  ;;  %v320_v59 = vsel %vm319_vm10, %v1440_v61, %v316_v28 }
  0xf0   :  { %v332_v7 = vmin.f32 %v307_v5, %v320_v59 }
  0xf1   :  { %v374_v42 = vsel %vm372_vm12, %v1120_v36, %v1121_v35  ;;  %v376_v43 = vsel %vm372_vm12, %v1121_v35, %v1120_v36 }
  0xf2   :  { %v390_v46 = vsel %vm1480_vm0, %v1384_v33, %v374_v42  ;;  %v391_v47 = vsel %vm1484_vm1, %v1387_v34, %v376_v43  ;;  %v369_v48 = vpop.permute.xlu1 %368 }
  0xf3   :  { %v394_v49 = vmin.f32 %v362_v37, %v390_v46  ;;  %v395_v50 = vmin.f32 %v363_v38, %v391_v47  ;;  %v373_v52 = vsel %vm372_vm12, %v365_v4, %v369_v48  ;;  %v375_v53 = vsel %vm372_vm12, %v369_v48, %v365_v4 }
  0xf4   :  { %v388_v60 = vsel %vm1480_vm0, %v1409_v54, %v373_v52  ;;  %v322_v4 = vsel %vm319_vm10, %v316_v28, %v1440_v61  ;;  %v389_v8 = vsel %vm1484_vm1, %v1425_v56, %v375_v53  ;;  %v361_v61 = vsel %vm1471_vm15, %v1425_v56, %v345_v57 }
  0xf5   :  { %v398_v63 = vmin.f32 %v334_v40, %v394_v49  ;;  %v399_v1 = vmin.f32 %v335_v44, %v395_v50  ;;  %v392_v6 = vmin.f32 %v360_v58, %v388_v60  ;;  %v329_v12 = vsel %vm70_vm13, %v1425_v56, %v322_v4 }
  0xf6   :  { %v393_v0 = vmin.f32 %v361_v61, %v389_v8  ;;  %v333_v17 = vmin.f32 %v299_v15, %v329_v12 }
  0xf7   :  { %v1539_v9 = vmin.f32 %v1384_v33, %v398_v63  ;;  %v1542_v11 = vmin.f32 %v1387_v34, %v399_v1  ;;  %v396_v13 = vmin.f32 %v332_v7, %v392_v6 }
  0xf8   :  { %v397_v18 = vmin.f32 %v333_v17, %v393_v0 }
  0xf9   :  { %v1127_v14 = vpack.i.bf16 %v1542_v11, %v1539_v9  ;;  %v1558_v19 = vmin.f32 %v1409_v54, %v396_v13 }
  0xfa   :  { %v1564_v20 = vmin.f32 %v1425_v56, %v397_v18 }
  0xfb   :  { %1128 = vrot.lane.b32.xlu0 %v1127_v14, %s1316_s14  ;;  %1123 = vrot.lane.b32.xlu1 %v1127_v14, %s1314_s12 }
  0xff   :  { %1133 = vrot.lane.b32.xlu1 %v1127_v14, %s1313_s1  ;;  %404 = vrot.lane.b32.xlu0 %v1558_v19, %s1314_s12 }
 0x103   :  { %420 = vrot.lane.b32.xlu1 %v1558_v19, %s1316_s14  ;;  %408 = vrot.lane.b32.xlu0 %v1564_v20, %s1314_s12 }
 0x107   :  { %424 = vrot.lane.b32.xlu1 %v1564_v20, %s1316_s14  ;;  %492 = vrot.lane.b32.xlu0 %v1558_v19, %s1313_s1 }
 0x10b   :  { %508 = vrot.lane.b32.xlu1 %v1558_v19, %s1315_s13  ;;  %496 = vrot.lane.b32.xlu0 %v1564_v20, %s1313_s1 }
 0x10f   :  { %512 = vrot.lane.b32.xlu1 %v1564_v20, %s1315_s13  ;;  %1138 = vrot.lane.b32.xlu0 %v1127_v14, %s1315_s13 }
 0x16d   :  { %v1129_v62 = vpop.permute.xlu0 %1128  ;;  %v1124_v16 = vpop.permute.xlu1 %1123 }
 0x16e   :  { %v1131_v21 = vunpack.i.h.bf16 %v1129_v62  ;;  %v1130_v22 = vunpack.i.l.bf16 %v1129_v62  ;;  %v1126_v23 = vunpack.i.h.bf16 %v1124_v16  ;;  %v1125_v24 = vunpack.i.l.bf16 %v1124_v16 }
 0x170   :  { %v429_v25 = vsel %vm372_vm12, %v1130_v22, %v1131_v21  ;;  %v431_v28 = vsel %vm372_vm12, %v1131_v21, %v1130_v22  ;;  %v413_v31 = vsel %vm344_vm11, %v1125_v24, %v1126_v23  ;;  %v415_v32 = vsel %vm344_vm11, %v1126_v23, %v1125_v24 }
 0x171   :  { %v1592_v35 = vsel %vm1480_vm0, %v1539_v9, %v429_v25  ;;  %v1597_v36 = vsel %vm1484_vm1, %v1542_v11, %v431_v28  ;;  %v1602_v37 = vsel %vm1467_vm14, %v1539_v9, %v415_v32  ;;  %v1607_v38 = vsel %vm1471_vm15, %v1542_v11, %v413_v31  ;;  %v1134_v40 = vpop.permute.xlu1 %1133  ;;  %v405_v41 = vpop.permute.xlu0 %404 }
 0x172   :  { %v1136_v1 = vunpack.i.h.bf16 %v1134_v40  ;;  %v1135_v4 = vunpack.i.l.bf16 %v1134_v40  ;;  %v530_v13 = vmin.f32 %v1602_v37, %v1592_v35  ;;  %v531_v23 = vmin.f32 %v1607_v38, %v1597_v36 }
 0x174   :  { %v503_v8 = vsel %vm67_vm9, %v1136_v1, %v1135_v4  ;;  %v501_v62 = vsel %vm67_vm9, %v1135_v4, %v1136_v1 }
 0x175   :  { %v421_v44 = vpop.permute.xlu1 %420  ;;  %v409_v45 = vpop.permute.xlu0 %408  ;;  %v506_v15 = vsel %vm67_vm9, %v1539_v9, %v503_v8 }
 0x176   :  { %v412_v46 = vsel %vm344_vm11, %v405_v41, %v409_v45  ;;  %v414_v47 = vsel %vm344_vm11, %v409_v45, %v405_v41 }
 0x177   :  { %v1624_v53 = vsel %vm1467_vm14, %v1558_v19, %v414_v47  ;;  %v1629_v57 = vsel %vm1471_vm15, %v1564_v20, %v412_v46 }
 0x179   :  { %v425_v48 = vpop.permute.xlu1 %424  ;;  %v493_v49 = vpop.permute.xlu0 %492 }
 0x17a   :  { %v428_v50 = vsel %vm372_vm12, %v421_v44, %v425_v48  ;;  %v430_v52 = vsel %vm372_vm12, %v425_v48, %v421_v44 }
 0x17b   :  { %v1634_v58 = vsel %vm1480_vm0, %v1558_v19, %v428_v50  ;;  %v1639_v59 = vsel %vm1484_vm1, %v1564_v20, %v430_v52 }
 0x17c   :  { %v528_v45 = vmin.f32 %v1624_v53, %v1634_v58  ;;  %v529_v1 = vmin.f32 %v1629_v57, %v1639_v59 }
 0x17d   :  { %v509_v6 = vpop.permute.xlu1 %508  ;;  %v497_v5 = vpop.permute.xlu0 %496 }
 0x17e   :  { %v502_v14 = vsel %vm67_vm9, %v497_v5, %v493_v49  ;;  %v500_v47 = vsel %vm67_vm9, %v493_v49, %v497_v5 }
 0x17f   :  { %v504_v28 = vsel %vm67_vm9, %v1558_v19, %v502_v14 }
 0x181   :  { %v1139_v7 = vpop.permute.xlu0 %1138  ;;  %v513_v61 = vpop.permute.xlu1 %512 }
 0x182   :  { %v1141_v12 = vunpack.i.h.bf16 %v1139_v7  ;;  %v1140_v0 = vunpack.i.l.bf16 %v1139_v7  ;;  %v516_v16 = vsel %vm319_vm10, %v509_v6, %v513_v61  ;;  %v518_v24 = vsel %vm319_vm10, %v513_v61, %v509_v6 }
 0x183   :  { %v524_v32 = vmin.f32 %v504_v28, %v516_v16  ;;  %v521_v41 = vsel %vm70_vm13, %v1564_v20, %v518_v24 }
 0x184   :  { %v517_v17 = vsel %vm319_vm10, %v1140_v0, %v1141_v12  ;;  %v519_v18 = vsel %vm319_vm10, %v1141_v12, %v1140_v0  ;;  %v525_v48 = vmin.f32 %v500_v47, %v521_v41 }
 0x185   :  { %v523_v21 = vsel %vm70_vm13, %v1542_v11, %v519_v18  ;;  %v526_v22 = vmin.f32 %v506_v15, %v517_v17  ;;  %v532_v50 = vmin.f32 %v524_v32, %v528_v45 }
 0x186   :  { %v527_v25 = vmin.f32 %v501_v62, %v523_v21  ;;  %v533_v4 = vmin.f32 %v525_v48, %v529_v1 }
 0x187   :  { %v534_v31 = vmin.f32 %v526_v22, %v530_v13  ;;  %v1692_v6 = vmin.f32 %v1558_v19, %v532_v50 }
 0x188   :  { %v535_v40 = vmin.f32 %v527_v25, %v531_v23  ;;  %v1698_v49 = vmin.f32 %v1564_v20, %v533_v4 }
 0x189   :  { %v1676_v44 = vmin.f32 %v1539_v9, %v534_v31 }
 0x18a   :  { %v1681_v46 = vmin.f32 %v1542_v11, %v535_v40 }
 0x18c   :  { %v1147_v52 = vpack.i.bf16 %v1681_v46, %v1676_v44 }
 0x18e   :  { %1148 = vrot.lane.b32.xlu0 %v1147_v52, %s1316_s14  ;;  %1143 = vrot.lane.b32.xlu1 %v1147_v52, %s1314_s12 }
 0x192   :  { %540 = vrot.lane.b32.xlu0 %v1692_v6, %s1314_s12  ;;  %1153 = vrot.lane.b32.xlu1 %v1147_v52, %s1313_s1 }
 0x196   :  { %544 = vrot.lane.b32.xlu0 %v1698_v49, %s1314_s12  ;;  %556 = vrot.lane.b32.xlu1 %v1692_v6, %s1316_s14 }
 0x19a   :  { %644 = vrot.lane.b32.xlu0 %v1692_v6, %s1313_s1  ;;  %560 = vrot.lane.b32.xlu1 %v1698_v49, %s1316_s14 }
 0x19e   :  { %648 = vrot.lane.b32.xlu0 %v1698_v49, %s1313_s1  ;;  %660 = vrot.lane.b32.xlu1 %v1692_v6, %s1315_s13 }
 0x1a2   :  { %1158 = vrot.lane.b32.xlu0 %v1147_v52, %s1315_s13  ;;  %664 = vrot.lane.b32.xlu1 %v1698_v49, %s1315_s13 }
 0x200   :  { %v1149_v5 = vpop.permute.xlu0 %1148  ;;  %v1144_v8 = vpop.permute.xlu1 %1143 }
 0x201   :  { %v1151_v7 = vunpack.i.h.bf16 %v1149_v5  ;;  %v1150_v61 = vunpack.i.l.bf16 %v1149_v5  ;;  %v1146_v12 = vunpack.i.h.bf16 %v1144_v8  ;;  %v1145_v0 = vunpack.i.l.bf16 %v1144_v8 }
 0x203   :  { %v565_v13 = vsel %vm372_vm12, %v1150_v61, %v1151_v7  ;;  %v567_v14 = vsel %vm372_vm12, %v1151_v7, %v1150_v61  ;;  %v549_v15 = vsel %vm344_vm11, %v1145_v0, %v1146_v12  ;;  %v551_v17 = vsel %vm344_vm11, %v1146_v12, %v1145_v0 }
 0x204   :  { %v1726_v18 = vsel %vm1480_vm0, %v1676_v44, %v565_v13  ;;  %v1731_v62 = vsel %vm1484_vm1, %v1681_v46, %v567_v14  ;;  %v1736_v16 = vsel %vm1467_vm14, %v1676_v44, %v551_v17  ;;  %v1741_v21 = vsel %vm1471_vm15, %v1681_v46, %v549_v15  ;;  %v541_v22 = vpop.permute.xlu0 %540  ;;  %v1154_v23 = vpop.permute.xlu1 %1153 }
 0x205   :  { %v1156_v7 = vunpack.i.h.bf16 %v1154_v23  ;;  %v1155_v61 = vunpack.i.l.bf16 %v1154_v23 }
 0x207   :  { %v655_v13 = vsel %vm67_vm9, %v1156_v7, %v1155_v61 }
 0x208   :  { %v545_v28 = vpop.permute.xlu0 %544  ;;  %v557_v31 = vpop.permute.xlu1 %556 }
 0x209   :  { %v548_v32 = vsel %vm344_vm11, %v541_v22, %v545_v28  ;;  %v550_v40 = vsel %vm344_vm11, %v545_v28, %v541_v22  ;;  %v682_v28 = vmin.f32 %v1736_v16, %v1726_v18 }
 0x20a   :  { %v1758_v50 = vsel %vm1467_vm14, %v1692_v6, %v550_v40  ;;  %v1763_v52 = vsel %vm1471_vm15, %v1698_v49, %v548_v32  ;;  %v658_v32 = vsel %vm67_vm9, %v1676_v44, %v655_v13  ;;  %v683_v13 = vmin.f32 %v1741_v21, %v1731_v62 }
 0x20c   :  { %v645_v41 = vpop.permute.xlu0 %644  ;;  %v561_v45 = vpop.permute.xlu1 %560 }
 0x20d   :  { %v564_v47 = vsel %vm372_vm12, %v557_v31, %v561_v45  ;;  %v566_v48 = vsel %vm372_vm12, %v561_v45, %v557_v31  ;;  %v653_v45 = vsel %vm67_vm9, %v1155_v61, %v1156_v7 }
 0x20e   :  { %v1768_v1 = vsel %vm1480_vm0, %v1692_v6, %v564_v47  ;;  %v1773_v4 = vsel %vm1484_vm1, %v1698_v49, %v566_v48 }
 0x210   :  { %v649_v12 = vpop.permute.xlu0 %648  ;;  %v661_v0 = vpop.permute.xlu1 %660 }
 0x211   :  { %v654_v31 = vsel %vm67_vm9, %v649_v12, %v645_v41 }
 0x212   :  { %v656_v7 = vsel %vm67_vm9, %v1692_v6, %v654_v31 }
 0x214   :  { %v1159_v14 = vpop.permute.xlu0 %1158  ;;  %v665_v22 = vpop.permute.xlu1 %664 }
 0x215   :  { %v1161_v15 = vunpack.i.h.bf16 %v1159_v14  ;;  %v1160_v17 = vunpack.i.l.bf16 %v1159_v14  ;;  %v668_v14 = vsel %vm319_vm10, %v661_v0, %v665_v22  ;;  %v670_v25 = vsel %vm319_vm10, %v665_v22, %v661_v0 }
 0x216   :  { %v652_v0 = vsel %vm67_vm9, %v645_v41, %v649_v12 }
 0x217   :  { %v669_v23 = vsel %vm319_vm10, %v1160_v17, %v1161_v15  ;;  %v671_v40 = vsel %vm319_vm10, %v1161_v15, %v1160_v17  ;;  %v676_v15 = vmin.f32 %v656_v7, %v668_v14 }
 0x218   :  { %v675_v47 = vsel %vm70_vm13, %v1681_v46, %v671_v40  ;;  %v678_v48 = vmin.f32 %v658_v32, %v669_v23  ;;  %v673_v32 = vsel %vm70_vm13, %v1698_v49, %v670_v25  ;;  %v680_v23 = vmin.f32 %v1758_v50, %v1768_v1 }
 0x219   :  { %v679_v8 = vmin.f32 %v653_v45, %v675_v47  ;;  %v677_v22 = vmin.f32 %v652_v0, %v673_v32 }
 0x21a   :  { %v686_v24 = vmin.f32 %v678_v48, %v682_v28  ;;  %v684_v28 = vmin.f32 %v676_v15, %v680_v23 }
 0x21b   :  { %v687_v61 = vmin.f32 %v679_v8, %v683_v13 }
 0x21c   :  { %v1807_v17 = vmin.f32 %v1676_v44, %v686_v24  ;;  %v681_v24 = vmin.f32 %v1763_v52, %v1773_v4  ;;  %v1826_v31 = vmin.f32 %v1692_v6, %v684_v28 }
 0x21d   :  { %v1815_v40 = vmin.f32 %v1681_v46, %v687_v61 }
 0x21e   :  { %v685_v25 = vmin.f32 %v677_v22, %v681_v24 }
 0x21f   :  { %v1167_v8 = vpack.i.bf16 %v1815_v40, %v1807_v17 }
 0x220   :  { %v1832_v41 = vmin.f32 %v1698_v49, %v685_v25 }
 0x221   :  { %1168 = vrot.lane.b32.xlu0 %v1167_v8, %s1316_s14  ;;  %1163 = vrot.lane.b32.xlu1 %v1167_v8, %s1314_s12 }
 0x225   :  { %692 = vrot.lane.b32.xlu0 %v1826_v31, %s1314_s12  ;;  %1173 = vrot.lane.b32.xlu1 %v1167_v8, %s1313_s1 }
 0x229   :  { %696 = vrot.lane.b32.xlu0 %v1832_v41, %s1314_s12  ;;  %708 = vrot.lane.b32.xlu1 %v1826_v31, %s1316_s14 }
 0x22d   :  { %796 = vrot.lane.b32.xlu0 %v1826_v31, %s1313_s1  ;;  %712 = vrot.lane.b32.xlu1 %v1832_v41, %s1316_s14 }
 0x231   :  { %800 = vrot.lane.b32.xlu0 %v1832_v41, %s1313_s1  ;;  %812 = vrot.lane.b32.xlu1 %v1826_v31, %s1315_s13 }
 0x235   :  { %1178 = vrot.lane.b32.xlu0 %v1167_v8, %s1315_s13  ;;  %816 = vrot.lane.b32.xlu1 %v1832_v41, %s1315_s13 }
 0x293   :  { %v1169_v12 = vpop.permute.xlu0 %1168  ;;  %v1164_v45 = vpop.permute.xlu1 %1163 }
 0x294   :  { %v1171_v7 = vunpack.i.h.bf16 %v1169_v12  ;;  %v1170_v61 = vunpack.i.l.bf16 %v1169_v12  ;;  %v1166_v15 = vunpack.i.h.bf16 %v1164_v45  ;;  %v1165_v32 = vunpack.i.l.bf16 %v1164_v45 }
 0x296   :  { %v717_v22 = vsel %vm372_vm12, %v1170_v61, %v1171_v7  ;;  %v703_v28 = vsel %vm344_vm11, %v1166_v15, %v1165_v32  ;;  %v719_v25 = vsel %vm372_vm12, %v1171_v7, %v1170_v61  ;;  %v701_v5 = vsel %vm344_vm11, %v1165_v32, %v1166_v15 }
 0x297   :  { %v693_v47 = vpop.permute.xlu0 %692  ;;  %v1174_v48 = vpop.permute.xlu1 %1173  ;;  %v1860_v12 = vsel %vm1480_vm0, %v1807_v17, %v717_v22  ;;  %v1865_v45 = vsel %vm1467_vm14, %v1807_v17, %v703_v28  ;;  %v1880_v22 = vsel %vm1484_vm1, %v1815_v40, %v719_v25  ;;  %v1885_v28 = vsel %vm1471_vm15, %v1815_v40, %v701_v5 }
 0x298   :  { %v1176_v8 = vunpack.i.h.bf16 %v1174_v48  ;;  %v1175_v24 = vunpack.i.l.bf16 %v1174_v48  ;;  %v834_v42 = vmin.f32 %v1865_v45, %v1860_v12 }
 0x29a   :  { %v807_v7 = vsel %vm67_vm9, %v1176_v8, %v1175_v24  ;;  %v805_v60 = vsel %vm67_vm9, %v1175_v24, %v1176_v8 }
 0x29b   :  { %v697_v14 = vpop.permute.xlu0 %696  ;;  %v709_v13 = vpop.permute.xlu1 %708 }
 0x29c   :  { %v702_v61 = vsel %vm344_vm11, %v697_v14, %v693_v47 }
 0x29d   :  { %v1901_v25 = vsel %vm1467_vm14, %v1826_v31, %v702_v61 }
 0x29f   :  { %v797_v23 = vpop.permute.xlu0 %796  ;;  %v713_v0 = vpop.permute.xlu1 %712 }
 0x2a0   :  { %v716_v63 = vsel %vm372_vm12, %v709_v13, %v713_v0  ;;  %v718_v15 = vsel %vm372_vm12, %v713_v0, %v709_v13  ;;  %v700_v13 = vsel %vm344_vm11, %v693_v47, %v697_v14  ;;  %v810_v47 = vsel %vm67_vm9, %v1807_v17, %v807_v7 }
 0x2a1   :  { %v1896_v0 = vsel %vm1480_vm0, %v1826_v31, %v716_v63  ;;  %v1906_v5 = vsel %vm1484_vm1, %v1832_v41, %v718_v15 }
 0x2a2   :  { %v832_v15 = vmin.f32 %v1901_v25, %v1896_v0 }
 0x2a3   :  { %v801_v48 = vpop.permute.xlu0 %800  ;;  %v813_v43 = vpop.permute.xlu1 %812 }
 0x2a4   :  { %v806_v32 = vsel %vm67_vm9, %v801_v48, %v797_v23  ;;  %v804_v33 = vsel %vm67_vm9, %v797_v23, %v801_v48 }
 0x2a5   :  { %v808_v63 = vsel %vm67_vm9, %v1826_v31, %v806_v32 }
 0x2a7   :  { %v1179_v56 = vpop.permute.xlu0 %1178  ;;  %v817_v14 = vpop.permute.xlu1 %816 }
 0x2a8   :  { %v1181_v8 = vunpack.i.h.bf16 %v1179_v56  ;;  %v1180_v24 = vunpack.i.l.bf16 %v1179_v56  ;;  %v820_v61 = vsel %vm319_vm10, %v813_v43, %v817_v14  ;;  %v822_v34 = vsel %vm319_vm10, %v817_v14, %v813_v43 }
 0x2a9   :  { %v825_v7 = vsel %vm70_vm13, %v1832_v41, %v822_v34  ;;  %v828_v32 = vmin.f32 %v808_v63, %v820_v61  ;;  %v705_v56 = vsel %vm1471_vm15, %v1832_v41, %v700_v13  ;;  %v835_v63 = vmin.f32 %v1885_v28, %v1880_v22 }
 0x2aa   :  { %v821_v54 = vsel %vm319_vm10, %v1180_v24, %v1181_v8  ;;  %v823_v43 = vsel %vm319_vm10, %v1181_v8, %v1180_v24  ;;  %v829_v14 = vmin.f32 %v804_v33, %v825_v7  ;;  %v833_v30 = vmin.f32 %v705_v56, %v1906_v5 }
 0x2ab   :  { %v827_v23 = vsel %vm70_vm13, %v1815_v40, %v823_v43  ;;  %v830_v48 = vmin.f32 %v810_v47, %v821_v54  ;;  %v836_v34 = vmin.f32 %v828_v32, %v832_v15  ;;  %v2360_v47 = vmax.f32 %v1607_v38, %v1597_v36 }
 0x2ac   :  { %v831_v61 = vmin.f32 %v805_v60, %v827_v23  ;;  %v837_v55 = vmin.f32 %v829_v14, %v833_v30  ;;  %v2358_v30 = vmax.f32 %v1624_v53, %v1634_v58  ;;  %v2361_v53 = vmax.f32 %v1629_v57, %v1639_v59 }
 0x2ad   :  { %v838_v13 = vmin.f32 %v830_v48, %v834_v42  ;;  %v1939_v29 = vmin.f32 %v1826_v31, %v836_v34  ;;  %v1976_v24 = vmax.f32 %v1542_v11, %v2360_v47  ;;  %v2362_v36 = vmax.f32 %v1758_v50, %v1768_v1 }
 0x2ae   :  { %v839_v51 = vmin.f32 %v831_v61, %v835_v63  ;;  %v1950_v54 = vmin.f32 %v1832_v41, %v837_v55  ;;  %v2359_v55 = vmax.f32 %v1602_v37, %v1592_v35  ;;  %v1986_v35 = vmax.f32 %v1564_v20, %v2361_v53 }
 0x2af   :  { %v1942_v33 = vmin.f32 %v1807_v17, %v838_v13  ;;  %844 = vrot.lane.b32.xlu0 %v1939_v29, %s1314_s12  ;;  %v2000_v38 = vmax.f32 %v1692_v6, %v2362_v36  ;;  %v2363_v57 = vmax.f32 %v1736_v16, %v1726_v18  ;;  %v2364_v59 = vmax.f32 %v1741_v21, %v1731_v62 }
 0x2b0   :  { %v1947_v8 = vmin.f32 %v1815_v40, %v839_v51  ;;  %v1964_v51 = vmax.f32 %v1558_v19, %v2358_v30  ;;  %v1970_v60 = vmax.f32 %v1539_v9, %v2359_v55  ;;  %v2365_v50 = vmax.f32 %v1763_v52, %v1773_v4 }
 0x2b1   :  { %v2006_v58 = vmax.f32 %v1676_v44, %v2363_v57  ;;  %v2012_v15 = vmax.f32 %v1681_v46, %v2364_v59  ;;  %v724_v62 = vmax.f32 %v1901_v25, %v1896_v0  ;;  %v726_v21 = vmax.f32 %v1865_v45, %v1860_v12 }
 0x2b2   :  { %v1182_v42 = vpack.i.bf16 %v1947_v8, %v1942_v33  ;;  %v1192_v37 = vpack.i.bf16 %v1976_v24, %v1970_v60  ;;  %v2022_v18 = vmax.f32 %v1698_v49, %v2365_v50  ;;  %v727_v52 = vmax.f32 %v1885_v28, %v1880_v22 }
 0x2b3   :  { %848 = vrot.lane.b32.xlu0 %v1950_v54, %s1314_s12  ;;  %v1202_v16 = vpack.i.bf16 %v2012_v15, %v2006_v58  ;;  %v725_v1 = vmax.f32 %v705_v56, %v1906_v5  ;;  %v2040_v4 = vmax.f32 %v1826_v31, %v724_v62  ;;  %v2043_v7 = vmax.f32 %v1807_v17, %v726_v21 }
 0x2b4   :  { %1183 = vrot.lane.b32.xlu1 %v1182_v42, %s1314_s12  ;;  %v2046_v0 = vmax.f32 %v1815_v40, %v727_v52 }
 0x2b5   :  { %v2053_v12 = vmax.f32 %v1832_v41, %v725_v1 }
 0x2b6   :  { %v1212_v45 = vpack.i.bf16 %v2046_v0, %v2043_v7 }
 0x2b7   :  { %1188 = vrot.lane.b32.xlu0 %v1182_v42, %s1316_s14 }
 0x2b8   :  { %860 = vrot.lane.b32.xlu1 %v1939_v29, %s1316_s14 }
 0x2bb   :  { %444 = vrot.lane.b32.xlu0 %v1964_v51, %s1313_s1 }
 0x2bc   :  { %864 = vrot.lane.b32.xlu1 %v1950_v54, %s1316_s14 }
 0x2bf   :  { %448 = vrot.lane.b32.xlu0 %v1986_v35, %s1313_s1 }
 0x2c0   :  { %1193 = vrot.lane.b32.xlu1 %v1192_v37, %s1313_s1 }
 0x2c3   :  { %1198 = vrot.lane.b32.xlu0 %v1192_v37, %s1315_s13 }
 0x2c4   :  { %460 = vrot.lane.b32.xlu1 %v1964_v51, %s1315_s13 }
 0x2c7   :  { %580 = vrot.lane.b32.xlu0 %v2000_v38, %s1313_s1 }
 0x2c8   :  { %464 = vrot.lane.b32.xlu1 %v1986_v35, %s1315_s13 }
 0x2cb   :  { %584 = vrot.lane.b32.xlu0 %v2022_v18, %s1313_s1 }
 0x2cc   :  { %1203 = vrot.lane.b32.xlu1 %v1202_v16, %s1313_s1 }
 0x2cf   :  { %1208 = vrot.lane.b32.xlu0 %v1202_v16, %s1315_s13 }
 0x2d0   :  { %596 = vrot.lane.b32.xlu1 %v2000_v38, %s1315_s13 }
 0x2d3   :  { %732 = vrot.lane.b32.xlu0 %v2040_v4, %s1313_s1 }
 0x2d4   :  { %600 = vrot.lane.b32.xlu1 %v2022_v18, %s1315_s13 }
 0x2d7   :  { %736 = vrot.lane.b32.xlu0 %v2053_v12, %s1313_s1 }
 0x2d8   :  { %1213 = vrot.lane.b32.xlu1 %v1212_v45, %s1313_s1 }
 0x2db   :  { %1218 = vrot.lane.b32.xlu0 %v1212_v45, %s1315_s13 }
 0x2dc   :  { %748 = vrot.lane.b32.xlu1 %v2040_v4, %s1315_s13 }
 0x2e0   :  { %752 = vrot.lane.b32.xlu1 %v2053_v12, %s1315_s13 }
 0x321   :  { %v845_v22 = vpop.permute.xlu0 %844 }
 0x325   :  { %v849_v28 = vpop.permute.xlu0 %848 }
 0x326   :  { %v1184_v25 = vpop.permute.xlu1 %1183  ;;  %v854_v63 = vsel %vm344_vm11, %v849_v28, %v845_v22  ;;  %v852_v57 = vsel %vm344_vm11, %v845_v22, %v849_v28  ;;  %v2368_v28 = vld [vmem:[#allocation17_spill] sm:$0xff] }
 0x327   :  { %v1186_v5 = vunpack.i.h.bf16 %v1184_v25  ;;  %v1185_v32 = vunpack.i.l.bf16 %v1184_v25  ;;  %v856_v59 = vsel %vm1467_vm14, %v1939_v29, %v854_v63  ;;  %v857_v45 = vsel %vm1471_vm15, %v1950_v54, %v852_v57  ;;  %v2369_v25 = vld [vmem:[#allocation12_spill] sm:$0xff] }
 0x329   :  { %v1189_v56 = vpop.permute.xlu0 %1188  ;;  %v853_v43 = vsel %vm344_vm11, %v1185_v32, %v1186_v5  ;;  %v855_v14 = vsel %vm344_vm11, %v1186_v5, %v1185_v32  ;;  %v234_v5 = vmul.f32 %v2369_v25, %v2368_v28 }
 0x32a   :  { %v1191_v23 = vunpack.i.h.bf16 %v1189_v56  ;;  %v1190_v48 = vunpack.i.l.bf16 %v1189_v56  ;;  %v861_v34 = vpop.permute.xlu1 %860  ;;  %v858_v42 = vsel %vm1467_vm14, %v1942_v33, %v855_v14  ;;  %v859_v30 = vsel %vm1471_vm15, %v1947_v8, %v853_v43 }
 0x32b   :  { %v237_v32 = vsel %vm235_vm6, %v234_v5, 0.0  ;;  %v269_v14 = vsel %vm235_vm6, %v2368_v28, 0.0 }
 0x32c   :  { %v869_v61 = vsel %vm372_vm12, %v1190_v48, %v1191_v23  ;;  %v871_v13 = vsel %vm372_vm12, %v1191_v23, %v1190_v48  ;;  %v252_v23 = vsel %vm235_vm6, %v2367_v3, 0.0  ;;  %v253_v48 = vsel %vm235_vm6, %v2369_v25, 0.0 }
 0x32d   :  { %v874_v55 = vsel %vm1480_vm0, %v1942_v33, %v869_v61  ;;  %v875_v47 = vsel %vm1484_vm1, %v1947_v8, %v871_v13  ;;  %v254_v63 = vadd.f32 %v253_v48, %v252_v23  ;;  %v445_v61 = vpop.permute.xlu0 %444 }
 0x32e   :  { %v878_v53 = vmax.f32 %v858_v42, %v874_v55  ;;  %v879_v37 = vmax.f32 %v859_v30, %v875_v47  ;;  %v865_v36 = vpop.permute.xlu1 %864 }
 0x32f   :  { %v868_v50 = vsel %vm372_vm12, %v861_v34, %v865_v36  ;;  %v870_v16 = vsel %vm372_vm12, %v865_v36, %v861_v34 }
 0x330   :  { %v2097_v62 = vmax.f32 %v1942_v33, %v878_v53  ;;  %v2100_v21 = vmax.f32 %v1947_v8, %v879_v37  ;;  %v872_v52 = vsel %vm1480_vm0, %v1939_v29, %v868_v50  ;;  %v873_v2 = vsel %vm1484_vm1, %v1950_v54, %v870_v16 }
 0x331   :  { %v876_v1 = vmax.f32 %v856_v59, %v872_v52  ;;  %v877_v22 = vmax.f32 %v857_v45, %v873_v2  ;;  %v449_v42 = vpop.permute.xlu0 %448 }
 0x332   :  { %v1222_v33 = vpack.i.bf16 %v2100_v21, %v2097_v62  ;;  %v1194_v13 = vpop.permute.xlu1 %1193 }
 0x333   :  { %v2114_v8 = vmax.f32 %v1939_v29, %v876_v1  ;;  %v2120_v26 = vmax.f32 %v1950_v54, %v877_v22  ;;  %v2366_v29 = vld [vmem:[#allocation15_spill] sm:$0xff]  ;;  %v1196_v16 = vunpack.i.h.bf16 %v1194_v13  ;;  %v1195_v52 = vunpack.i.l.bf16 %v1194_v13 }
 0x334   :  { %1223 = vrot.lane.b32.xlu1 %v1222_v33, %s1313_s1  ;;  %v233_v27 = vmul.f32 %v2367_v3, %v2366_v29  ;;  %v268_v43 = vsel %vm235_vm6, %v2366_v29, 0.0 }
 0x335   :  { %884 = vrot.lane.b32.xlu0 %v2114_v8, %s1313_s1  ;;  %v270_v34 = vadd.f32 %v269_v14, %v268_v43  ;;  %v1199_v55 = vpop.permute.xlu0 %1198  ;;  %v454_v14 = vsel %vm67_vm9, %v449_v42, %v445_v61 }
 0x336   :  { %v236_v54 = vsel %vm235_vm6, %v233_v27, 0.0  ;;  %v461_v30 = vpop.permute.xlu1 %460  ;;  %v1201_v2 = vunpack.i.h.bf16 %v1199_v55  ;;  %v1200_v1 = vunpack.i.l.bf16 %v1199_v55 }
 0x337   :  { %v238_v56 = vadd.f32 %v237_v32, %v236_v54 }
 0x338   :  { %900 = vrot.lane.b32.xlu1 %v2114_v8, %s1315_s13  ;;  %v471_v23 = vsel %vm319_vm10, %v1201_v2, %v1200_v1 }
 0x339   :  { %888 = vrot.lane.b32.xlu0 %v2120_v26, %s1313_s1  ;;  %v581_v53 = vpop.permute.xlu0 %580 }
 0x33a   :  { %v465_v47 = vpop.permute.xlu1 %464 }
 0x33b   :  { %v470_v48 = vsel %vm319_vm10, %v465_v47, %v461_v30 }
 0x33c   :  { %904 = vrot.lane.b32.xlu1 %v2120_v26, %s1315_s13 }
 0x33d   :  { %1228 = vrot.lane.b32.xlu0 %v1222_v33, %s1315_s13  ;;  %v585_v36 = vpop.permute.xlu0 %584 }
 0x33e   :  { %v1204_v37 = vpop.permute.xlu1 %1203  ;;  %v590_v43 = vsel %vm67_vm9, %v585_v36, %v581_v53 }
 0x33f   :  { %v1206_v45 = vunpack.i.h.bf16 %v1204_v37  ;;  %v1205_v33 = vunpack.i.l.bf16 %v1204_v37  ;;  %v468_v37 = vsel %vm319_vm10, %v461_v30, %v465_v47 }
 0x341   :  { %v1209_v59 = vpop.permute.xlu0 %1208  ;;  %v591_v13 = vsel %vm67_vm9, %v1206_v45, %v1205_v33 }
 0x342   :  { %v597_v57 = vpop.permute.xlu1 %596  ;;  %v1211_v22 = vunpack.i.h.bf16 %v1209_v59  ;;  %v1210_v27 = vunpack.i.l.bf16 %v1209_v59  ;;  %v592_v59 = vsel %vm67_vm9, %v2000_v38, %v590_v43 }
 0x344   :  { %v607_v55 = vsel %vm319_vm10, %v1211_v22, %v1210_v27 }
 0x345   :  { %v2143_v5 = vpop.permute.xlu0 %732  ;;  %v611_v43 = vsel %vm70_vm13, %v2012_v15, %v607_v55 }
 0x346   :  { %v601_v50 = vpop.permute.xlu1 %600 }
 0x347   :  { %v606_v32 = vsel %vm319_vm10, %v601_v50, %v597_v57 }
 0x349   :  { %v737_v30 = vpop.permute.xlu0 %736 }
 0x34a   :  { %v2145_v54 = vpop.permute.xlu1 %1213 }
 0x34e   :  { %v749_v47 = vpop.permute.xlu1 %748 }
 0x35c   :  { %239 = vadd.xlane.f32.xlu0 %v238_v56  ;;  %v452_v56 = vsel %vm67_vm9, %v445_v61, %v449_v42  ;;  %v609_v61 = vsel %vm70_vm13, %v2022_v18, %v606_v32  ;;  %v469_v42 = vsel %vm319_vm10, %v1200_v1, %v1201_v2  ;;  %v473_v32 = vsel %vm70_vm13, %v1986_v35, %v470_v48 }
 0x35d   :  { %v588_v2 = vsel %vm67_vm9, %v581_v53, %v585_v36  ;;  %v453_v48 = vsel %vm67_vm9, %v1195_v52, %v1196_v16  ;;  %v477_v25 = vmax.f32 %v452_v56, %v473_v32 }
 0x35f   :  { %v481_v56 = vmax.f32 %v1986_v35, %v477_v25  ;;  %v2371_v35 = vld [vmem:[#allocation13_spill] sm:$0xff] }
 0x360   :  { %271 = vadd.xlane.f32.xlu0 %v270_v34  ;;  %255 = vadd.xlane.f32.xlu1 %v254_v63  ;;  %v604_v34 = vsel %vm319_vm10, %v597_v57, %v601_v50  ;;  %v455_v63 = vsel %vm67_vm9, %v1196_v16, %v1195_v52  ;;  %v605_v57 = vsel %vm319_vm10, %v1210_v27, %v1211_v22  ;;  %v1219_v52 = vpop.permute.xlu0 %1218 }
 0x361   :  { %v475_v50 = vsel %vm70_vm13, %v1976_v24, %v471_v23  ;;  %v612_v1 = vmax.f32 %v592_v59, %v604_v34  ;;  %v456_v22 = vsel %vm67_vm9, %v1964_v51, %v454_v14  ;;  %v594_v27 = vsel %vm67_vm9, %v2006_v58, %v591_v13 }
 0x362   :  { %v613_v23 = vmax.f32 %v588_v2, %v609_v61  ;;  %v458_v53 = vsel %vm67_vm9, %v1970_v60, %v455_v63  ;;  %v476_v36 = vmax.f32 %v456_v22, %v468_v37  ;;  %v614_v34 = vmax.f32 %v594_v27, %v605_v57  ;;  %v753_v2 = vpop.permute.xlu1 %752 }
 0x363   :  { %v478_v59 = vmax.f32 %v458_v53, %v469_v42  ;;  %v479_v14 = vmax.f32 %v453_v48, %v475_v50  ;;  %v589_v13 = vsel %vm67_vm9, %v1205_v33, %v1206_v45  ;;  %v616_v28 = vmax.f32 %v2000_v38, %v612_v1 }
 0x364   :  { %v615_v3 = vmax.f32 %v589_v13, %v611_v43  ;;  %v617_v55 = vmax.f32 %v2022_v18, %v613_v23  ;;  %v480_v61 = vmax.f32 %v1964_v51, %v476_v36  ;;  %v618_v16 = vmax.f32 %v2006_v58, %v614_v34 }
 0x365   :  { %v482_v63 = vmax.f32 %v1970_v60, %v478_v59  ;;  %v483_v42 = vmax.f32 %v1976_v24, %v479_v14  ;;  %v620_v45 = vsub.f32 %v1558_v19, %v616_v28  ;;  %v1216_v38 = vunpack.i.h.bf16 %v2145_v54  ;;  %v2370_v60 = vld [vmem:[#allocation16_spill] sm:$0xff]  ;;  %v2373_v19 = vld [vmem:[#allocation18_spill] sm:$0xff] }
 0x366   :  { %v619_v37 = vmax.f32 %v2012_v15, %v615_v3  ;;  %v1215_v18 = vunpack.i.l.bf16 %v2145_v54  ;;  %v621_v51 = vsub.f32 %v1564_v20, %v617_v55  ;;  %v1221_v33 = vunpack.i.h.bf16 %v1219_v52  ;;  %v2372_v15 = vld [vmem:[#allocation14_spill] sm:$0xff] }
 0x367   :  { %v1220_v58 = vunpack.i.l.bf16 %v1219_v52  ;;  %v758_v57 = vsel %vm319_vm10, %v753_v2, %v749_v47  ;;  %v484_v50 = vsub.f32 %v2370_v60, %v480_v61  ;;  %v622_v24 = vsub.f32 %v1539_v9, %v618_v16 }
 0x368   :  { %v486_v25 = vsub.f32 %v2371_v35, %v482_v63  ;;  %v487_v3 = vsub.f32 %v2372_v15, %v483_v42  ;;  %v485_v28 = vsub.f32 %v2373_v19, %v481_v56  ;;  %v742_v54 = vsel %vm67_vm9, %v737_v30, %v2143_v5 }
 0x369   :  { %v623_v20 = vsub.f32 %v1542_v11, %v619_v37  ;;  %v743_v32 = vsel %vm67_vm9, %v1216_v38, %v1215_v18  ;;  %v756_v1 = vsel %vm319_vm10, %v749_v47, %v753_v2  ;;  %v761_v9 = vsel %vm70_vm13, %v2053_v12, %v758_v57 }
 0x36a   :  { %v624_v22 = vmax.f32 %v620_v45, 0.0  ;;  %v625_v27 = vmax.f32 %v621_v51, 0.0  ;;  %v757_v43 = vsel %vm319_vm10, %v1220_v58, %v1221_v33  ;;  %v759_v23 = vsel %vm319_vm10, %v1221_v33, %v1220_v58 }
 0x36b   :  { %v488_v48 = vmax.f32 %v484_v50, 0.0  ;;  %v626_v11 = vmax.f32 %v622_v24, 0.0  ;;  %v740_v53 = vsel %vm67_vm9, %v2143_v5, %v737_v30  ;;  %v744_v47 = vsel %vm67_vm9, %v2040_v4, %v742_v54 }
 0x36c   :  { %v489_v36 = vmax.f32 %v485_v28, 0.0  ;;  %v746_v34 = vsel %vm67_vm9, %v2043_v7, %v743_v32  ;;  %v764_v59 = vmax.f32 %v744_v47, %v756_v1  ;;  %v765_v14 = vmax.f32 %v740_v53, %v761_v9 }
 0x36d   :  { %v490_v13 = vmax.f32 %v486_v25, 0.0  ;;  %v763_v55 = vsel %vm70_vm13, %v2046_v0, %v759_v23  ;;  %v766_v61 = vmax.f32 %v746_v34, %v757_v43  ;;  %v627_v16 = vmax.f32 %v623_v20, 0.0 }
 0x36e   :  { %v628_v52 = vmul.f32 %v624_v22, %v488_v48  ;;  %v629_v5 = vmul.f32 %v625_v27, %v489_v36  ;;  %v741_v2 = vsel %vm67_vm9, %v1215_v18, %v1216_v38  ;;  %v491_v63 = vmax.f32 %v487_v3, 0.0 }
 0x36f   :  { %v630_v30 = vmul.f32 %v626_v11, %v490_v13  ;;  %v767_v42 = vmax.f32 %v741_v2, %v763_v55  ;;  %v768_v56 = vmax.f32 %v2040_v4, %v764_v59  ;;  %v769_v37 = vmax.f32 %v2053_v12, %v765_v14 }
 0x370   :  { %v770_v45 = vmax.f32 %v2043_v7, %v766_v61  ;;  %v631_v51 = vmul.f32 %v627_v16, %v491_v63  ;;  %v632_v33 = vsub.f32 %v624_v22, %v628_v52  ;;  %v633_v58 = vsub.f32 %v625_v27, %v629_v5 }
 0x371   :  { %v634_v57 = vsub.f32 %v626_v11, %v630_v30  ;;  %v771_v60 = vmax.f32 %v2046_v0, %v767_v42  ;;  %v772_v50 = vsub.f32 %v1692_v6, %v768_v56  ;;  %v773_v24 = vsub.f32 %v1698_v49, %v769_v37 }
 0x372   :  { %v774_v38 = vsub.f32 %v1676_v44, %v770_v45  ;;  %v635_v18 = vsub.f32 %v627_v16, %v631_v51  ;;  %v636_v35 = vmax.f32 %v632_v33, 0.0  ;;  %v637_v25 = vmax.f32 %v633_v58, 0.0 }
 0x373   :  { %v638_v4 = vmax.f32 %v634_v57, 0.0  ;;  %v775_v12 = vsub.f32 %v1681_v46, %v771_v60  ;;  %v776_v15 = vmax.f32 %v772_v50, 0.0  ;;  %v777_v7 = vmax.f32 %v773_v24, 0.0 }
 0x374   :  { %v778_v3 = vmax.f32 %v774_v38, 0.0  ;;  %v640_v28 = vadd.f32 %v636_v35, %v488_v48  ;;  %v641_v54 = vadd.f32 %v637_v25, %v489_v36  ;;  %v639_v0 = vmax.f32 %v635_v18, 0.0 }
 0x375   :  { %v642_v32 = vadd.f32 %v638_v4, %v490_v13  ;;  %v779_v6 = vmax.f32 %v775_v12, 0.0 }
 0x376   :  { %v780_v1 = vmul.f32 %v776_v15, %v640_v28  ;;  %v781_v49 = vmul.f32 %v777_v7, %v641_v54  ;;  %v643_v23 = vadd.f32 %v639_v0, %v491_v63 }
 0x377   :  { %v782_v9 = vmul.f32 %v778_v3, %v642_v32 }
 0x378   :  { %v784_v11 = vsub.f32 %v776_v15, %v780_v1  ;;  %v785_v53 = vsub.f32 %v777_v7, %v781_v49  ;;  %v783_v47 = vmul.f32 %v779_v6, %v643_v23 }
 0x379   :  { %v786_v48 = vsub.f32 %v778_v3, %v782_v9 }
 0x37a   :  { %v788_v2 = vmax.f32 %v784_v11, 0.0  ;;  %v789_v63 = vmax.f32 %v785_v53, 0.0  ;;  %v787_v56 = vsub.f32 %v779_v6, %v783_v47  ;;  %v2376_v47 = vld [vmem:[#allocation12_spill] sm:$0xff] }
 0x37b   :  { %v790_v35 = vmax.f32 %v786_v48, 0.0 }
 0x37c   :  { %v792_v25 = vadd.f32 %v788_v2, %v640_v28  ;;  %v791_v12 = vmax.f32 %v787_v56, 0.0  ;;  %v793_v15 = vadd.f32 %v789_v63, %v641_v54 }
 0x37e   :  { %v795_v6 = vadd.f32 %v791_v12, %v643_v23 }
 0x3a6   :  { %v1224_v19 = vpop.permute.xlu1 %1223 }
 0x3a7   :  { %v885_v20 = vpop.permute.xlu0 %884  ;;  %v1226_v44 = vunpack.i.h.bf16 %v1224_v19  ;;  %v1225_v22 = vunpack.i.l.bf16 %v1224_v19 }
 0x3a9   :  { %v895_v36 = vsel %vm67_vm9, %v1226_v44, %v1225_v22  ;;  %v893_v58 = vsel %vm67_vm9, %v1225_v22, %v1226_v44  ;;  %v985_v22 = vrot.slane %v2366_v29, 2 }
 0x3aa   :  { %v901_v27 = vpop.permute.xlu1 %900  ;;  %v898_v45 = vsel %vm67_vm9, %v2097_v62, %v895_v36 }
 0x3ab   :  { %v889_v43 = vpop.permute.xlu0 %888 }
 0x3ac   :  { %v894_v46 = vsel %vm67_vm9, %v889_v43, %v885_v20  ;;  %v892_v59 = vsel %vm67_vm9, %v885_v20, %v889_v43  ;;  %v794_v20 = vadd.f32 %v790_v35, %v642_v32  ;;  %v2374_v43 = vld [vmem:[#allocation17_spill] sm:$0xff]  ;;  %v2375_v32 = vld [vmem:[#allocation11_spill] sm:$0xff] }
 0x3ad   :  { %v896_v14 = vsel %vm67_vm9, %v2114_v8, %v894_v46 }
 0x3ae   :  { %v905_v34 = vpop.permute.xlu1 %904 }
 0x3af   :  { %v908_v13 = vsel %vm319_vm10, %v901_v27, %v905_v34  ;;  %v910_v55 = vsel %vm319_vm10, %v905_v34, %v901_v27  ;;  %v1229_v61 = vpop.permute.xlu0 %1228 }
 0x3b0   :  { %v913_v16 = vsel %vm70_vm13, %v2120_v26, %v910_v55  ;;  %v916_v52 = vmax.f32 %v896_v14, %v908_v13  ;;  %v1231_v5 = vunpack.i.h.bf16 %v1229_v61  ;;  %v1230_v30 = vunpack.i.l.bf16 %v1229_v61 }
 0x3b1   :  { %v917_v42 = vmax.f32 %v892_v59, %v913_v16 }
 0x3b2   :  { %v920_v37 = vmax.f32 %v2114_v8, %v916_v52  ;;  %v909_v51 = vsel %vm319_vm10, %v1230_v30, %v1231_v5  ;;  %v911_v33 = vsel %vm319_vm10, %v1231_v5, %v1230_v30 }
 0x3b3   :  { %v921_v57 = vmax.f32 %v2120_v26, %v917_v42  ;;  %v915_v60 = vsel %vm70_vm13, %v2100_v21, %v911_v33  ;;  %v918_v8 = vmax.f32 %v898_v45, %v909_v51 }
 0x3b4   :  { %v924_v50 = vsub.f32 %v1826_v31, %v920_v37  ;;  %v919_v24 = vmax.f32 %v893_v58, %v915_v60 }
 0x3b5   :  { %v925_v38 = vsub.f32 %v1832_v41, %v921_v57  ;;  %v922_v18 = vmax.f32 %v2097_v62, %v918_v8 }
 0x3b6   :  { %v928_v4 = vmax.f32 %v924_v50, 0.0  ;;  %v923_v39 = vmax.f32 %v2100_v21, %v919_v24 }
 0x3b7   :  { %v929_v26 = vmax.f32 %v925_v38, 0.0  ;;  %v926_v7 = vsub.f32 %v1807_v17, %v922_v18 }
 0x3b8   :  { %v932_v10 = vmul.f32 %v928_v4, %v792_v25  ;;  %v927_v3 = vsub.f32 %v1815_v40, %v923_v39  ;;  %v986_v40 = vrot.slane %v2374_v43, 2 }
 0x3b9   :  { %v933_v19 = vmul.f32 %v929_v26, %v793_v15  ;;  %v930_v31 = vmax.f32 %v926_v7, 0.0 }
 0x3ba   :  { %v936_v0 = vsub.f32 %v928_v4, %v932_v10  ;;  %v931_v41 = vmax.f32 %v927_v3, 0.0 }
 0x3bb   :  { %v937_v62 = vsub.f32 %v929_v26, %v933_v19  ;;  %v934_v1 = vmul.f32 %v930_v31, %v794_v20 }
 0x3bc   :  { %v940_v28 = vmax.f32 %v936_v0, 0.0  ;;  %v935_v49 = vmul.f32 %v931_v41, %v795_v6 }
 0x3bd   :  { %v941_v9 = vmax.f32 %v937_v62, 0.0  ;;  %v938_v21 = vsub.f32 %v930_v31, %v934_v1 }
 0x3be   :  { %v944_v44 = vadd.f32 %v940_v28, %v792_v25  ;;  %v939_v54 = vsub.f32 %v931_v41, %v935_v49 }
 0x3bf   :  { %v945_v17 = vadd.f32 %v941_v9, %v793_v15  ;;  %v942_v27 = vmax.f32 %v938_v21, 0.0 }
 0x3c0   :  { %v967_v46 = vsel %vm235_vm6, %v944_v44, 0.0  ;;  %v949_v11 = vmul.f32 %v944_v44, %v2375_v32  ;;  %v943_v53 = vmax.f32 %v939_v54, 0.0  ;;  %v1026_v34 = vrot.slane %v944_v44, 6 }
 0x3c1   :  { %v968_v23 = vsel %vm235_vm6, %v945_v17, 0.0  ;;  %v950_v48 = vmul.f32 %v945_v17, %v2376_v47  ;;  %v946_v36 = vadd.f32 %v942_v27, %v794_v20  ;;  %v989_v13 = vmul.f32 %v985_v22, %v944_v44 }
 0x3c2   :  { %v969_v59 = vadd.f32 %v968_v23, %v967_v46  ;;  %v951_v14 = vsel %vm235_vm6, %v949_v11, 0.0  ;;  %v947_v29 = vadd.f32 %v943_v53, %v795_v6  ;;  %v990_v16 = vmul.f32 %v986_v40, %v945_v17 }
 0x3c3   :  { %v952_v55 = vsel %vm235_vm6, %v950_v48, 0.0  ;;  %v1027_v61 = vrot.slane %v946_v36, 6  ;;  %v991_v52 = vmul.f32 %v985_v22, %v946_v36  ;;  %v1029_v30 = vrot.slane %v945_v17, 6 }
 0x3c4   :  { %970 = vadd.xlane.f32.xlu1 %v969_v59  ;;  %v953_v5 = vadd.f32 %v952_v55, %v951_v14  ;;  %v1030_v2 = vrot.slane %v947_v29, 6  ;;  %v992_v63 = vmul.f32 %v986_v40, %v947_v29  ;;  %v998_v56 = vrot.slane %v989_v13, 6 }
 0x3c5   :  { %v1028_v42 = vsel %vm997_vm2, %v1026_v34, %v1027_v61  ;;  %v999_v37 = vrot.slane %v991_v52, 6  ;;  %v1001_v33 = vrot.slane %v990_v16, 6 }
 0x3c6   :  { %954 = vadd.xlane.f32.xlu0 %v953_v5  ;;  %v1031_v45 = vsel %vm997_vm2, %v1029_v30, %v1030_v2  ;;  %v1034_v51 = vsel %vm235_vm6, %v1028_v42, 0.0  ;;  %v1002_v58 = vrot.slane %v992_v63, 6 }
 0x3c7   :  { %v1035_v57 = vsel %vm235_vm6, %v1031_v45, 0.0  ;;  %v1000_v60 = vsel %vm997_vm2, %v998_v56, %v999_v37 }
 0x3c8   :  { %v1036_v8 = vadd.f32 %v1035_v57, %v1034_v51  ;;  %v1003_v50 = vsel %vm997_vm2, %v1001_v33, %v1002_v58  ;;  %v1006_v24 = vsel %vm235_vm6, %v1000_v60, 0.0 }
 0x3c9   :  { %v1007_v38 = vsel %vm235_vm6, %v1003_v50, 0.0 }
 0x3ca   :  { %1037 = vadd.xlane.f32.xlu1 %v1036_v8  ;;  %v1008_v18 = vadd.f32 %v1007_v38, %v1006_v24 }
 0x3cc   :  { %1009 = vadd.xlane.f32.xlu0 %v1008_v18 }
 0x3e9   :  { %v240_v35 = vpop.xlane.xlu0 %239 }
 0x3ea   :  { %v241_v25 = vrot.slane %v240_v35, 4 }
 0x3ec   :  { %v242_v4 = vadd.f32 %v241_v25, %v240_v35 }
 0x3ed   :  { %v272_v39 = vpop.xlane.xlu0 %271  ;;  %v256_v12 = vpop.xlane.xlu1 %255 }
 0x3ee   :  { %v243_v15 = vrot.slane %v242_v4, 2  ;;  %v273_v26 = vrot.slane %v272_v39, 4  ;;  %v257_v7 = vrot.slane %v256_v12, 4 }
 0x3f0   :  { %v274_v10 = vadd.f32 %v273_v26, %v272_v39  ;;  %v258_v3 = vadd.f32 %v257_v7, %v256_v12  ;;  %v244_v19 = vadd.f32 %v243_v15, %v242_v4 }
 0x3f2   :  { %v275_v31 = vrot.slane %v274_v10, 2  ;;  %v259_v20 = vrot.slane %v258_v3, 2  ;;  %v245_v0 = vrot.slane %v244_v19, 1 }
 0x3f4   :  { %v246_v41 = vadd.f32 %v245_v0, %v244_v19  ;;  %v260_v6 = vadd.f32 %v259_v20, %v258_v3  ;;  %v276_v62 = vadd.f32 %v275_v31, %v274_v10 }
 0x3f6   :  { %1074 = vpush %v246_v41  ;;  %v261_v1 = vrot.slane %v260_v6, 1  ;;  %v277_v28 = vrot.slane %v276_v62, 1 }
 0x3f8   :  { %v262_v49 = vadd.f32 %v261_v1, %v260_v6  ;;  %v278_v9 = vadd.f32 %v277_v28, %v276_v62 }
 0x3fa   :  { %1076 = vpush %v262_v49 }
 0x3fb   :  { %1078 = vpush %v278_v9 }
 0x427   :  { %s1075_s17 = spop %1074 }
 0x428   :  { %250 = sst [smem:[#allocation7]] %s1075_s17 }
 0x42b   :  { %s1077_s18 = spop %1076 }
 0x42c   :  { %s1079_s19 = spop %1078  ;;  %266 = sst [smem:[#allocation7 + $0x1]] %s1077_s18 }
 0x42d   :  { %282 = sst [smem:[#allocation7 + $0x2]] %s1079_s19 }
 0x451   :  { %v971_v21 = vpop.xlane.xlu1 %970 }
 0x452   :  { %v972_v44 = vrot.slane %v971_v21, 4 }
 0x453   :  { %v955_v54 = vpop.xlane.xlu0 %954 }
 0x454   :  { %v973_v22 = vadd.f32 %v972_v44, %v971_v21  ;;  %v956_v17 = vrot.slane %v955_v54, 4 }
 0x456   :  { %v974_v27 = vrot.slane %v973_v22, 2  ;;  %v957_v43 = vadd.f32 %v956_v17, %v955_v54 }
 0x457   :  { %v1038_v40 = vpop.xlane.xlu1 %1037 }
 0x458   :  { %v958_v46 = vrot.slane %v957_v43, 2  ;;  %v1039_v32 = vrot.slane %v1038_v40, 4  ;;  %v975_v11 = vadd.f32 %v974_v27, %v973_v22 }
 0x459   :  { %v1010_v53 = vpop.xlane.xlu0 %1009 }
 0x45a   :  { %v1040_v23 = vadd.f32 %v1039_v32, %v1038_v40  ;;  %v1011_v47 = vrot.slane %v1010_v53, 4  ;;  %v959_v48 = vadd.f32 %v958_v46, %v957_v43  ;;  %v976_v36 = vrot.slane %v975_v11, 1 }
 0x45c   :  { %v1041_v34 = vrot.slane %v1040_v23, 2  ;;  %v1012_v59 = vadd.f32 %v1011_v47, %v1010_v53  ;;  %v960_v14 = vrot.slane %v959_v48, 1  ;;  %v977_v61 = vadd.f32 %v976_v36, %v975_v11 }
 0x45e   :  { %v1042_v29 = vadd.f32 %v1041_v34, %v1040_v23  ;;  %v1013_v13 = vrot.slane %v1012_v59, 2  ;;  %v961_v55 = vadd.f32 %v960_v14, %v959_v48 }
 0x460   :  { %v1014_v16 = vadd.f32 %v1013_v13, %v1012_v59  ;;  %1080 = vpush %v961_v55  ;;  %v1043_v52 = vrot.slane %v1042_v29, 1 }
 0x461   :  { %1082 = vpush %v977_v61 }
 0x462   :  { %v1015_v5 = vrot.slane %v1014_v16, 1  ;;  %v1044_v2 = vadd.f32 %v1043_v52, %v1042_v29 }
 0x464   :  { %v1016_v30 = vadd.f32 %v1015_v5, %v1014_v16 }
 0x466   :  { %1084 = vpush %v1016_v30 }
 0x467   :  { %1086 = vpush %v1044_v2 }
 0x491   :  { %s1081_s20 = spop %1080 }
 0x492   :  { %s1083_s21 = spop %1082  ;;  %965 = sst [smem:[#allocation7 + $0x3]] %s1081_s20 }
 0x493   :  { %981 = sst [smem:[#allocation7 + $0x4]] %s1083_s21 }
 0x497   :  { %s1085_s22 = spop %1084 }
 0x498   :  { %s1087_s23 = spop %1086  ;;  %1020 = sst [smem:[#allocation7 + $0x5]] %s1085_s22 }
 0x499   :  { %1048 = sst [smem:[#allocation7 + $0x6]] %s1087_s23 }
 0x49a   :  { %1299 = shalt.err (!%p1296_p4)
}
 0x49b   :  { %s1319_s4 = smov [#allocation7]  }
 0x49c   :  { %1056 = dma.smem_to_hbm %s1319_s4, 16, %s2326_s3, [#allocation4]  }
 0x49d   :  { %1304 = dma.done.wait [#allocation4], 16  }
 0x49e   :  { %1305 = vsyncadd [#allocation4], 4294967280 }
 0x49f   :  { %1060 = sfence }
 0x4a0   :  { %1061 = vsyncpa [#allocation3], 1 }
 0x4a1   :  { %1062 = vsyncpa [#allocation6], 1 }
 0x4a2   :  { %1063 = vsyncpa [#allocation4], 1 }

</bundles_post_ra>
